<compile_context>
chip_gen: v7x
topology: tpu7x:2x2x1
jax: 0.10.0
libtpu: 0.0.40
codegen_flags: <defaults>
</compile_context>

<pallas_src>
import functools

import jax
import jax.numpy as jnp
from jax.experimental import pallas as pl
from jax.experimental.pallas import tpu as pltpu


def _round_up(n, m):
    return ((n + m - 1) // m) * m


def mlp_kernel(x_ref, w1_ref, b1_ref, w2_ref, b2_ref, o_ref, acc_ref):
    """One (batch tile, H tile) step: acc += relu(x @ W1_k + b1_k) @ W2_k."""
    k = pl.program_id(1)

    @pl.when(k == 0)
    def _():
        acc_ref[...] = jnp.zeros_like(acc_ref)

    # f32 -> bf16 cast of the streamed activations happens here (free VPU op),
    # so no bf16 copy of x is ever materialized in HBM.
    x = x_ref[...].astype(w1_ref.dtype)
    h = jnp.dot(x, w1_ref[...], preferred_element_type=jnp.float32)
    h = jnp.maximum(h + b1_ref[...], 0.0)                 # bias + ReLU in f32
    acc_ref[...] += jnp.dot(h.astype(w2_ref.dtype), w2_ref[...],
                            preferred_element_type=jnp.float32)

    @pl.when(k == pl.num_programs(1) - 1)
    def _():
        o_ref[...] = (acc_ref[...] + b2_ref[...]).astype(o_ref.dtype)


def prepare_params(w1, b1, w2, b2, *, block_h=512,
                   matmul_dtype=jnp.bfloat16):
    """One-time conversion of weights to kernel layout.

    w1: [D, H], b1: [1, H] (or [H]), w2: [H, C], b2: [1, C] (or [C]).
    Pads C to a lane-dense multiple of 128, pads H to a multiple of the H-tile
    (zero pads: relu(x@0 + 0) @ 0 contributes nothing), casts matmul operands
    to bf16 and biases to f32.  Do this ONCE, not per forward call.
    """
    assert block_h % 128 == 0
    D, H = w1.shape
    C = w2.shape[1]
    b1 = b1.reshape(1, H)
    b2 = b2.reshape(1, C)

    bh = min(block_h, _round_up(H, 128))
    H_pad = _round_up(H, bh)
    C_pad = _round_up(max(C, 128), 128)

    w1p = jnp.pad(w1, ((0, 0), (0, H_pad - H))).astype(matmul_dtype)
    b1p = jnp.pad(b1, ((0, 0), (0, H_pad - H))).astype(jnp.float32)
    w2p = jnp.pad(w2, ((0, H_pad - H), (0, C_pad - C))).astype(matmul_dtype)
    b2p = jnp.pad(b2, ((0, 0), (0, C_pad - C))).astype(jnp.float32)

    return {"w1": w1p, "b1": b1p, "w2": w2p, "b2": b2p,
            "block_h": bh, "num_classes": C}


@functools.partial(jax.jit,
                   static_argnames=("block_b", "block_h", "num_classes"))
def _forward(x, w1, b1, w2, b2, *, block_b, block_h, num_classes):
    B, D = x.shape
    H_pad = w1.shape[1]
    C_pad = w2.shape[1]
    assert H_pad % block_h == 0

    grid = (pl.cdiv(B, block_b), H_pad // block_h)

    itemsize = lambda a: a.size * a.dtype.itemsize
    cost = pl.CostEstimate(
        flops=2 * B * (D * H_pad + H_pad * C_pad),
        transcendentals=0,
        bytes_accessed=(itemsize(x) + itemsize(w1) + itemsize(b1)
                        + itemsize(w2) + itemsize(b2) + B * C_pad * 2),
    )

    out_padded = pl.pallas_call(
        mlp_kernel,
        out_shape=jax.ShapeDtypeStruct((B, C_pad), jnp.bfloat16),
        grid_spec=pltpu.PrefetchScalarGridSpec(
            num_scalar_prefetch=0,
            grid=grid,
            in_specs=[
                # x: one (block_b, D) f32 tile per batch step; constant along k
                # so Pallas fetches it once per batch tile.
                pl.BlockSpec((block_b, D), lambda i, k: (i, 0)),
                # Weights / first bias: streamed along the H (k) axis.
                pl.BlockSpec((D, block_h), lambda i, k: (0, k)),
                pl.BlockSpec((1, block_h), lambda i, k: (0, k)),
                pl.BlockSpec((block_h, C_pad), lambda i, k: (k, 0)),
                # b2: constant block -> fetched once, stays VMEM-resident.
                pl.BlockSpec((1, C_pad), lambda i, k: (0, 0)),
            ],
            out_specs=pl.BlockSpec((block_b, C_pad), lambda i, k: (i, 0)),
            scratch_shapes=[pltpu.VMEM((block_b, C_pad), jnp.float32)],
        ),
        compiler_params=pltpu.CompilerParams(
            dimension_semantics=("parallel", "arbitrary")),
        cost_estimate=cost,
    )(x, w1, b1, w2, b2)

    # Lane-dense bf16 logits; slice off the class padding (bf16 slice, cheap).
    return out_padded[:, :num_classes]


def linear_classifier(x, params, *, block_b=256):
    """x: [B, D] (any float dtype) -> logits [B, num_classes] in bf16."""
    return _forward(x, params["w1"], params["b1"], params["w2"], params["b2"],
                    block_b=block_b, block_h=params["block_h"],
                    num_classes=params["num_classes"])


def init_params(key, input_dim, hidden_dim, num_classes, dtype=jnp.float32):
    """Deterministic init mimicking nn.Linear's U(-1/sqrt(fan_in), 1/sqrt(fan_in))."""
    k1, k2, k3, k4 = jax.random.split(key, 4)
    bound1 = 1.0 / jnp.sqrt(input_dim)
    bound2 = 1.0 / jnp.sqrt(hidden_dim)
    w1 = jax.random.uniform(k1, (input_dim, hidden_dim), dtype, -bound1, bound1)
    b1 = jax.random.uniform(k2, (1, hidden_dim), dtype, -bound1, bound1)
    w2 = jax.random.uniform(k3, (hidden_dim, num_classes), dtype, -bound2, bound2)
    b2 = jax.random.uniform(k4, (1, num_classes), dtype, -bound2, bound2)
    return w1, b1, w2, b2


if __name__ == "__main__":
    # Small shapes consistent with the module: hidden = 4*input_dim, 26 classes.
    # batch=512 with block_b=256 and block_h=512 exercises a 2x2 grid
    # (2 pipelined batch tiles x 2 accumulated H tiles).
    batch = 512
    input_dim = 256
    hidden_dim = 4 * input_dim
    num_classes = 26

    key = jax.random.PRNGKey(0)
    kx, kp = jax.random.split(key)
    x = jax.random.normal(kx, (batch, input_dim), jnp.float32)
    w1, b1, w2, b2 = init_params(kp, input_dim, hidden_dim, num_classes)

    # One-time weight conversion (hoisted out of the per-call path).
    params = prepare_params(w1, b1, w2, b2, block_h=512)

    out = linear_classifier(x, params, block_b=256)
    out = jax.block_until_ready(out)

    # Pure-JAX f32 reference of the same math (kernel uses bf16 matmul operands
    # and bf16 output, so compare with a looser tolerance).
    ref = jnp.maximum(x @ w1 + b1, 0.0) @ w2 + b2
    assert out.shape == (batch, num_classes)
    assert out.dtype == jnp.bfloat16
    err = jnp.max(jnp.abs(out.astype(jnp.float32) - ref))
    assert jnp.allclose(out.astype(jnp.float32), ref, atol=5e-2, rtol=5e-2), float(err)

    print("KERNEL_OK")
</pallas_src>

<mosaic_0001>
module attributes {stable_mosaic.version = 11 : i64} {
  func.func @mlp_kernel(%arg0: i32, %arg1: i32, %arg2: memref<256x256xf32, #tpu.memory_space<vmem>>, %arg3: memref<256x512xbf16, #tpu.memory_space<vmem>>, %arg4: memref<1x512xf32, #tpu.memory_space<vmem>>, %arg5: memref<512x128xbf16, #tpu.memory_space<vmem>>, %arg6: memref<1x128xf32, #tpu.memory_space<vmem>>, %arg7: memref<256x128xbf16, #tpu.memory_space<vmem>>, %arg8: memref<256x128xf32, #tpu.memory_space<vmem>>) attributes {dimension_semantics = [#tpu.dimension_semantics<parallel>, #tpu.dimension_semantics<arbitrary>], iteration_bounds = array<i64: 2, 2>, scalar_prefetch = 0 : i64, scratch_operands = 1 : i64, tpu.core_type = #tpu.core_type<tc>, window_params = [{transform_indices = @transform_0, window_bounds = array<i64: 256, 256>}, {transform_indices = @transform_1, window_bounds = array<i64: 256, 512>}, {transform_indices = @transform_2, window_bounds = array<i64: 1, 512>}, {transform_indices = @transform_3, window_bounds = array<i64: 512, 128>}, {pipeline_mode = #tpu.pipeline_mode<synchronous>, transform_indices = @transform_4, window_bounds = array<i64: 1, 128>}, {transform_indices = @transform_5, window_bounds = array<i64: 256, 128>}]} {
    %c0_i32 = arith.constant 0 : i32
    %0 = arith.cmpi eq, %arg1, %c0_i32 : i32
    %1 = arith.extui %0 : i1 to i32
    %c0_i32_0 = arith.constant 0 : i32
    %2 = arith.cmpi ne, %1, %c0_i32_0 : i32
    scf.if %2 {
      %cst_15 = arith.constant 0.000000e+00 : f32
      %21 = vector.broadcast %cst_15 : f32 to vector<256x128xf32>
      %c0_16 = arith.constant 0 : index
      %c0_17 = arith.constant 0 : index
      %22 = vector.load %arg8[%c0_16, %c0_17] : memref<256x128xf32, #tpu.memory_space<vmem>>, vector<256x128xf32>
      tpu.vector_store %arg8[%c0_16, %c0_17], %21 {strides = array<i32>} : memref<256x128xf32, #tpu.memory_space<vmem>>, vector<256x128xf32>,
    } else {
    }
    %c0 = arith.constant 0 : index
    %c0_1 = arith.constant 0 : index
    %3 = vector.load %arg2[%c0, %c0_1] : memref<256x256xf32, #tpu.memory_space<vmem>>, vector<256x256xf32>
    %4 = arith.truncf %3 : vector<256x256xf32> to vector<256x256xbf16>
    %c0_2 = arith.constant 0 : index
    %c0_3 = arith.constant 0 : index
    %5 = vector.load %arg3[%c0_2, %c0_3] : memref<256x512xbf16, #tpu.memory_space<vmem>>, vector<256x512xbf16>
    %cst = arith.constant dense<0.000000e+00> : vector<256x512xf32>
    %6 = tpu.matmul %4, %5, %cst {dimension_numbers = #tpu.dot_dimension_numbers<[1], [0], [0], [1], [0, 0, 1, 1], [], []>} : vector<256x256xbf16>, vector<256x512xbf16>, vector<256x512xf32> -> vector<256x512xf32>
    %c0_4 = arith.constant 0 : index
    %c0_5 = arith.constant 0 : index
    %7 = vector.load %arg4[%c0_4, %c0_5] : memref<1x512xf32, #tpu.memory_space<vmem>>, vector<1x512xf32>
    %8 = vector.broadcast %7 : vector<1x512xf32> to vector<256x512xf32>
    %9 = arith.addf %6, %8 : vector<256x512xf32>
    %cst_6 = arith.constant 0.000000e+00 : f32
    %10 = vector.broadcast %cst_6 : f32 to vector<256x512xf32>
    %11 = arith.maximumf %9, %10 : vector<256x512xf32>
    %c0_7 = arith.constant 0 : index
    %c0_8 = arith.constant 0 : index
    %12 = vector.load %arg8[%c0_7, %c0_8] : memref<256x128xf32, #tpu.memory_space<vmem>>, vector<256x128xf32>
    %13 = arith.truncf %11 : vector<256x512xf32> to vector<256x512xbf16>
    %c0_9 = arith.constant 0 : index
    %c0_10 = arith.constant 0 : index
    %14 = vector.load %arg5[%c0_9, %c0_10] : memref<512x128xbf16, #tpu.memory_space<vmem>>, vector<512x128xbf16>
    %cst_11 = arith.constant dense<0.000000e+00> : vector<256x128xf32>
    %15 = tpu.matmul %13, %14, %cst_11 {dimension_numbers = #tpu.dot_dimension_numbers<[1], [0], [0], [1], [0, 0, 1, 1], [], []>} : vector<256x512xbf16>, vector<512x128xbf16>, vector<256x128xf32> -> vector<256x128xf32>
    %16 = arith.addf %12, %15 : vector<256x128xf32>
    %c0_12 = arith.constant 0 : index
    %c0_13 = arith.constant 0 : index
    %17 = vector.load %arg8[%c0_12, %c0_13] : memref<256x128xf32, #tpu.memory_space<vmem>>, vector<256x128xf32>
    tpu.vector_store %arg8[%c0_12, %c0_13], %16 {strides = array<i32>} : memref<256x128xf32, #tpu.memory_space<vmem>>, vector<256x128xf32>,
    %c1_i32 = arith.constant 1 : i32
    %18 = arith.cmpi eq, %arg1, %c1_i32 : i32
    %19 = arith.extui %18 : i1 to i32
    %c0_i32_14 = arith.constant 0 : i32
    %20 = arith.cmpi ne, %19, %c0_i32_14 : i32
    scf.if %20 {
      %c0_15 = arith.constant 0 : index
      %c0_16 = arith.constant 0 : index
      %21 = vector.load %arg8[%c0_15, %c0_16] : memref<256x128xf32, #tpu.memory_space<vmem>>, vector<256x128xf32>
      %c0_17 = arith.constant 0 : index
      %c0_18 = arith.constant 0 : index
      %22 = vector.load %arg6[%c0_17, %c0_18] : memref<1x128xf32, #tpu.memory_space<vmem>>, vector<1x128xf32>
      %23 = vector.broadcast %22 : vector<1x128xf32> to vector<256x128xf32>
      %24 = arith.addf %21, %23 : vector<256x128xf32>
      %25 = arith.truncf %24 : vector<256x128xf32> to vector<256x128xbf16>
      %c0_19 = arith.constant 0 : index
      %c0_20 = arith.constant 0 : index
      %26 = vector.load %arg7[%c0_19, %c0_20] : memref<256x128xbf16, #tpu.memory_space<vmem>>, vector<256x128xbf16>
      tpu.vector_store %arg7[%c0_19, %c0_20], %25 {strides = array<i32>} : memref<256x128xbf16, #tpu.memory_space<vmem>>, vector<256x128xbf16>,
    } else {
    }
    return
  }
  func.func @transform_0(%arg0: i32, %arg1: i32) -> (i32, i32) {
    %c0_i32 = arith.constant 0 : i32
    %c0_i32_0 = arith.constant 0 : i32
    return %arg0, %c0_i32 : i32, i32
  }
  func.func @transform_1(%arg0: i32, %arg1: i32) -> (i32, i32) {
    %c0_i32 = arith.constant 0 : i32
    %c0_i32_0 = arith.constant 0 : i32
    return %c0_i32, %arg1 : i32, i32
  }
  func.func @transform_2(%arg0: i32, %arg1: i32) -> (i32, i32) {
    %c0_i32 = arith.constant 0 : i32
    %c0_i32_0 = arith.constant 0 : i32
    return %c0_i32, %arg1 : i32, i32
  }
  func.func @transform_3(%arg0: i32, %arg1: i32) -> (i32, i32) {
    %c0_i32 = arith.constant 0 : i32
    %c0_i32_0 = arith.constant 0 : i32
    return %arg1, %c0_i32 : i32, i32
  }
  func.func @transform_4(%arg0: i32, %arg1: i32) -> (i32, i32) {
    %c0_i32 = arith.constant 0 : i32
    %c0_i32_0 = arith.constant 0 : i32
    %c0_i32_1 = arith.constant 0 : i32
    return %c0_i32, %c0_i32_0 : i32, i32
  }
  func.func @transform_5(%arg0: i32, %arg1: i32) -> (i32, i32) {
    %c0_i32 = arith.constant 0 : i32
    %c0_i32_0 = arith.constant 0 : i32
    return %arg0, %c0_i32 : i32, i32
  }
}

</mosaic_0001>

<bundles_post_ra>
// kernel: _forward.1
= control target key start
LH: loop header
LB: loop body
LE: loop exit
PB: predicated region body
PF: predicated region fallthrough
CT: control target
= control target key end

     0   :  { %s4251_s0 = inlined_call_operand.hbm [shape: f32[512,256], index: 0, kind: input, shape index: {}]   ;;  %s4252_s1 = inlined_call_operand.hbm [shape: bf16[256,1024], index: 1, kind: input, shape index: {}]   ;;  %s4253_s2 = inlined_call_operand.hbm [shape: f32[1,1024], index: 2, kind: input, shape index: {}]   ;;  %s4254_s3 = inlined_call_operand.hbm [shape: bf16[1024,128], index: 3, kind: input, shape index: {}]   ;;  %s4255_s4 = inlined_call_operand.vmem [shape: f32[1,128], index: 4, kind: input, shape index: {}]   ;;  %s4256_s5 = inlined_call_operand.vmem [shape: bf16[512,128], index: 5, kind: output, shape index: {}]  }
   0x1   :  { %4271 = sst [smem:[#allocation21_spill]] %s4251_s0 }
   0x2   :  { %4272 = sst [smem:[#allocation22_spill]] %s4252_s1 }
   0x3   :  { %4273 = sst [smem:[#allocation23_spill]] %s4255_s4 }
   0x4   :  { %4274 = sst [smem:[#allocation24_spill]] %s4256_s5 }
   0x5   :  { %10 = vsyncpa [#allocation4], 0 }
   0x6   :  { %12 = vsyncpa [#allocation4 + $0x1], 0 }
   0x7   :  { %13 = vsyncpa [#allocation6], 0 }
   0x8   :  { %15 = vsyncpa [#allocation6 + $0x1], 0 }
   0x9   :  { %16 = vsyncpa [#allocation9], 0 }
   0xa   :  { %18 = vsyncpa [#allocation9 + $0x1], 0  ;;  %s3566_s18 = smov 0   ;;  %s3568_s19 = smov 0  }
   0xb   :  { %s3570_s20 = smov 0   ;;  %s3572_s21 = smov 0  }
   0xc   :  { %s3574_s22 = smov 0   ;;  %s3576_s23 = smov 0  }
   0xd   :  { %s3578_s24 = smov 0   ;;  %s3580_s25 = smov 0  }
   0xe   :  { %s3582_s26 = smov 0   ;;  %s3584_s27 = smov 0  }
   0xf   :  { %s3586_s28 = smov 0  }
  0x10 LB: > { %4275 = sst [smem:[#allocation13_spill]] %s3500_s22  ;;  %p4258_p0 = scmp.eq.s32.totalorder %s3524_s28, 0  ;;  %s3524_s28 = sphi %s3586_s28, %s24_s28   ;;  %s3520_s27 = sphi %s3584_s27, %s4315_s27   ;;  %s3516_s26 = sphi %s3582_s26, %s4320_s26   ;;  %s3512_s25 = sphi %s3580_s25, %s4313_s25   ;;  %s3508_s24 = sphi %s3578_s24, %s4319_s24   ;;  %s3504_s23 = sphi %s3576_s23, %s4312_s23   ;;  %s3500_s22 = sphi %s3574_s22, %s4311_s22   ;;  %s3496_s21 = sphi %s3572_s21, %s4310_s21   ;;  %s3492_s20 = sphi %s3570_s20, %s4318_s20   ;;  %s3488_s19 = sphi %s3568_s19, %s4317_s19   ;;  %s3484_s18 = sphi %s3566_s18, %s4316_s18  }
  0x11   : > { %4276 = sst [smem:[#allocation14_spill]] %s3504_s23  ;;  %p76_p1 = scmp.ne.s32.totalorder %s3492_s20, %s3488_s19 }
  0x12   : > { %4277 = sst [smem:[#allocation15_spill]] %s3508_s24  ;;  %p4257_p3 = scmp.lt.s32.totalorder %s3524_s28, 4 }
  0x13   : > { %4278 = sst [smem:[#allocation16_spill]] %s3512_s25  ;;  %p78_p4 = por %p76_p1, %p4258_p0 }
  0x14   : > { %4279 = sst [smem:[#allocation17_spill]] %s3520_s27  ;;  %s230_s30 = sand.u32 1, %s3524_s28  }
  0x15   : > { %s3632_s6 = sand.u32 1, %s3492_s20   ;;  %s2708_s8 = sshll.u32 %s3516_s26, 8 }
  0x16   : > { %s2557_s7 = sshll.u32 %s3632_s6, 9  ;;  %s4280_s1 = sld [smem:[#allocation22_spill]] }
  0x17   : > { %s234_s12 = scalar_lea.vmem [#allocation5], %s2557_s7  ;;  %p3643_p5 = pnand %p4257_p3, %p78_p4 }
  0x18   : > { %s241_s13 = sshll.u32 %s234_s12, 4  ;;  %s3650_s15 = scalar_lea.sflag [#allocation6], %s230_s30  ;;  %s3647_s13 = int_to_ptr.vmem [resolvable:$true] %s241_s13 }
  0x19   : > { %s4281_s14 = scalar_select %p3643_p5, 1, 0 }
  0x1a   : > { %p3656_p8 = pneg %p3643_p5 }
  0x1c   : > { %s3639_s11 = scalar_lea.hbm %s4280_s1, %s2708_s8  ;;  %s3311_s9 = scalar_lea.hbm %s4280_s1, 16384 }
  0x1d   : > { %s3306_s16 = scalar_lea.hbm %s3639_s11, 8192  ;;  %p3312_p11 = scmp.lt.u32.totalorder %s3639_s11, %s4280_s1 }
  0x1e   : > { %p3307_p7 = scmp.ne.s32.totalorder %s3639_s11, %s3306_s16  ;;  %p3313_p12 = scmp.lt.u32.totalorder %s3311_s9, %s3306_s16 }
  0x1f   : > { %p3315_p1 = scmp.lt.u32.totalorder %s3306_s16, %s3639_s11 }
  0x20   : > { %p3309_p9 = pnand %p3656_p8, %p3307_p7  ;;  %p3314_p13 = por %p3313_p12, %p3312_p11 }
  0x22   : > { %p3310_p10 = pneg %p3309_p9  ;;  %p3316_p4 = por %p3315_p1, %p3314_p13 }
  0x24   : > { %p3317_p3 = pnand %p3316_p4, %p3310_p10 }
  0x26   : > { %3320 = shalt.err (!%p3317_p3)
}
  0x27   : > { %s3321_s30 = scalar_lea.vmem %s3647_s13, 8192  ;;  %s3526_s7 = smov [#allocation5]  }
  0x28   : > { %p3322_p7 = scmp.ne.s32.totalorder %s3647_s13, %s3321_s30  ;;  %s3326_s8 = sshll.u32 %s3526_s7, 4  ;;  %s3327_s8 = int_to_ptr.vmem [resolvable:$false] %s3326_s8 }
  0x29   : > { %s3328_s10 = scalar_lea.vmem %s3327_s8, 16384  ;;  %p3329_p0 = scmp.lt.s32.totalorder %s3647_s13, %s3327_s8 }
  0x2a   : > { %p3324_p9 = pnand %p3322_p7, %p3656_p8  ;;  %p3330_p6 = scmp.lt.s32.totalorder %s3328_s10, %s3321_s30 }
  0x2c   : > { %p3325_p2 = pneg %p3324_p9  ;;  %p3331_p11 = por %p3330_p6, %p3329_p0 }
  0x2e   : > { %p3332_p12 = pnand %p3331_p11, %p3325_p2 }
  0x30   : > { %3335 = shalt.err (!%p3332_p12)
}
  0x31   : > { %s3527_s16 = smov 512   ;;  %s4259_s9 = smov 256  }
  0x32   : > { %s4260_s12 = smov 16   ;;  %p289_p0 = scmp.lt.s32.totalorder %s3524_s28, 5 }
  0x33   : > { %3076 = dma.hbm_to_vmem [thread:$0]  (!%p3643_p5), %s3639_s11, 8192, %s3647_s13, %s3650_s15, %s3527_s16, %s4259_s9, %s4260_s12  }
  0x34   : > { %p4283_p2 = scmp.ge.s32.totalorder %s3524_s28, 1  ;;  %s4261_s7 = sadd.s32 4294967295, %s3524_s28  }
  0x35   : > { %s33_s8 = sadd.s32 1, %s3516_s26  ;;  %s36_s10 = sadd.s32 1, %s3520_s27 }
  0x36   : > { %p3685_p3 = pnand %p4283_p2, %p289_p0  ;;  %p34_p6 = scmp.ge.s32.totalorder %s33_s8, 2 }
  0x37   : > { %s43_s29 = sadd.s32 1, %s3504_s23  ;;  %p50_p10 = scmp.ne.s32.totalorder %s3504_s23, %s3500_s22 }
  0x38   : > { %s4284_s30 = scalar_select %p3685_p3, 1, 0 }
  0x39   : > { %s4322_s8 = smov (%p34_p6, %s33_s8), 0  ;;  %s4324_s10 = smov (!%p34_p6, %s36_s10), %s3520_s27 }
  0x3a   : > { %4285 = sst [smem:[#allocation18_spill]] %s4322_s8  ;;  %p4286_p13 = scmp.eq.s32.totalorder %s3524_s28, 0 }
  0x3b   : > { %p56_p4 = scmp.ne.s32.totalorder %s3500_s22, %s3496_s21  ;;  %p38_p7 = scmp.ge.s32.totalorder %s4324_s10, 2 }
  0x3c   : > { %p3700_p1 = por %p4286_p13, %p50_p10  ;;  %p57_p9 = scmp.eq.s32.totalorder %s4261_s7, 0 }
  0x3d   : > { %s66_s13 = ssub.s32 %s3516_s26, %s4322_s8  ;;  %s208_s16 = sand.u32 1, %s3504_s23  }
  0x3e   : > { %s4326_s10 = smov (%p38_p7, %s4324_s10), 0  ;;  %p3713_p11 = por %p57_p9, %p56_p4 }
  0x3f   : > { %4288 = sst [smem:[#allocation19_spill]] %s4326_s10  ;;  %p67_p12 = scmp.eq.s32.totalorder %s66_s13, 0 }
  0x40   : > { %s4289_s9 = scalar_select %p3713_p11, 1, 0 }
  0x41   : > { %s40_s12 = ssub.s32 %s3520_s27, %s4326_s10  ;;  %p4290_p0 = scmp.ne.s32.totalorder %s3488_s19, %s3484_s18 }
  0x42   : > { %p41_p6 = scmp.eq.s32.totalorder %s40_s12, 0  ;;  %s4292_s7 = sadd.s32 1, %s3492_s20 }
  0x43   : > { %p3722_p2 = por %p4290_p0, %p57_p9  ;;  %s2553_s4 = sshll.u32 %s208_s16, 9 }
  0x44   : > { %s3729_s1 = scalar_select %p67_p12, %s3492_s20, %s4292_s7  }
  0x45   : > { %s4291_s21 = scalar_select %p3722_p2, 1, 0 }
  0x46   : > { %s3732_s8 = scalar_select %p41_p6, %s3504_s23, %s43_s29  }
  0x47   : > { %s2707_s24 = sshll.u32 %s3520_s27, 13  ;;  %s4294_s0 = sld [smem:[#allocation21_spill]] }
  0x48   : > { %4293 = sst [smem:[#allocation20_spill]] %s3732_s8  ;;  %s212_s18 = scalar_lea.vmem [#allocation3], %s2553_s4 }
  0x49   : > { %s220_s13 = sshll.u32 %s212_s18, 4  ;;  %p4295_p10 = scmp.lt.s32.totalorder %s3524_s28, 4  ;;  %s3748_s13 = int_to_ptr.vmem [resolvable:$true] %s220_s13 }
  0x4a   : > { %s2560_s29 = sshll.u32 %s3632_s6, 2  ;;  %s3751_s5 = scalar_lea.sflag [#allocation4], %s208_s16 }
  0x4b   : > { %p3744_p13 = pnand %p4295_p10, %p3700_p1 }
  0x4d   : > { %s3738_s22 = scalar_lea.hbm %s4294_s0, %s2707_s24  ;;  %p3338_p7 = pneg %p3744_p13 }
  0x4e   : > { %s3336_s24 = scalar_lea.hbm %s3738_s22, 8192  ;;  %s3341_s7 = scalar_lea.hbm %s4294_s0, 16384 }
  0x4f   : > { %p3337_p4 = scmp.ne.s32.totalorder %s3738_s22, %s3336_s24  ;;  %p3342_p1 = scmp.lt.u32.totalorder %s3738_s22, %s4294_s0 }
  0x50   : > { %p3343_p0 = scmp.lt.u32.totalorder %s3341_s7, %s3336_s24  ;;  %p3345_p10 = scmp.lt.u32.totalorder %s3336_s24, %s3738_s22 }
  0x51   : > { %p3339_p9 = pnand %p3338_p7, %p3337_p4 }
  0x52   : > { %p3344_p6 = por %p3343_p0, %p3342_p1 }
  0x53   : > { %p3340_p12 = pneg %p3339_p9 }
  0x54   : > { %p3346_p2 = por %p3345_p10, %p3344_p6 }
  0x56   : > { %p3347_p11 = pnand %p3346_p2, %p3340_p12 }
  0x58   : > { %3350 = shalt.err (!%p3347_p11)
}
  0x59   : > { %s3351_s16 = scalar_lea.vmem %s3748_s13, 8192  ;;  %s3530_s4 = smov [#allocation3]  }
  0x5a   : > { %p3352_p4 = scmp.ne.s32.totalorder %s3748_s13, %s3351_s16  ;;  %s3356_s25 = sshll.u32 %s3530_s4, 4  ;;  %s3357_s25 = int_to_ptr.vmem [resolvable:$false] %s3356_s25 }
  0x5b   : > { %s3358_s11 = scalar_lea.vmem %s3357_s25, 16384  ;;  %p3359_p5 = scmp.lt.s32.totalorder %s3748_s13, %s3357_s25 }
  0x5c   : > { %p3354_p9 = pnand %p3352_p4, %p3338_p7  ;;  %p3360_p1 = scmp.lt.s32.totalorder %s3358_s11, %s3351_s16 }
  0x5e   : > { %p3355_p3 = pneg %p3354_p9  ;;  %p3361_p0 = por %p3360_p1, %p3359_p5 }
  0x60   : > { %p3362_p6 = pnand %p3361_p0, %p3355_p3 }
  0x62   : > { %3365 = shalt.err (!%p3362_p6)
}
  0x63   : > { %s4297_s24 = smov 16   ;;  %s4298_s7 = smov 256  }
  0x64   : > { %3073 = dma.hbm_to_vmem [thread:$0]  (!%p3744_p13), %s3738_s22, 8192, %s3748_s13, %s3751_s5, %s4298_s7, %s4298_s7, %s4297_s24  }
  0x65   : > { %s2709_s18 = sshll.u32 %s3516_s26, 6  ;;  %s255_s4 = scalar_lea.vmem [#allocation7], %s2560_s29 }
  0x66   : > { %s263_s25 = sshll.u32 %s255_s4, 4  ;;  %s261_s0 = scalar_lea.hbm %s4253_s2, %s2709_s18  ;;  %s264_s25 = int_to_ptr.vmem [resolvable:$true] %s263_s25 }
  0x67   : > { %s3366_s12 = scalar_lea.hbm %s261_s0, 64  ;;  %s3371_s8 = scalar_lea.hbm %s4253_s2, 128 }
  0x68   : > { %p3367_p5 = scmp.ne.s32.totalorder %s261_s0, %s3366_s12  ;;  %p3372_p2 = scmp.lt.u32.totalorder %s261_s0, %s4253_s2 }
  0x69   : > { %p3373_p13 = scmp.lt.u32.totalorder %s3371_s8, %s3366_s12  ;;  %p3375_p12 = scmp.lt.u32.totalorder %s3366_s12, %s261_s0 }
  0x6a   : > { %p3369_p3 = pnand %p3367_p5, %p3656_p8 }
  0x6b   : > { %p3374_p7 = por %p3373_p13, %p3372_p2 }
  0x6c   : > { %p3370_p11 = pneg %p3369_p3 }
  0x6d   : > { %p3376_p10 = por %p3375_p12, %p3374_p7 }
  0x6f   : > { %p3377_p4 = pnand %p3376_p10, %p3370_p11 }
  0x71   : > { %3380 = shalt.err (!%p3377_p4)
}
  0x72   : > { %s3381_s13 = scalar_lea.vmem %s264_s25, 64  ;;  %s3531_s29 = smov [#allocation7]  }
  0x73   : > { %p3382_p9 = scmp.ne.s32.totalorder %s264_s25, %s3381_s13  ;;  %s3386_s5 = sshll.u32 %s3531_s29, 4  ;;  %s3387_s5 = int_to_ptr.vmem [resolvable:$false] %s3386_s5 }
  0x74   : > { %s3388_s27 = scalar_lea.vmem %s3387_s5, 128  ;;  %p3389_p6 = scmp.lt.s32.totalorder %s264_s25, %s3387_s5 }
  0x75   : > { %p3384_p1 = pnand %p3382_p9, %p3656_p8  ;;  %p3390_p5 = scmp.lt.s32.totalorder %s3388_s27, %s3381_s13 }
  0x77   : > { %p3385_p0 = pneg %p3384_p1  ;;  %p3391_p3 = por %p3390_p5, %p3389_p6 }
  0x79   : > { %p3392_p2 = pnand %p3391_p3, %p3385_p0 }
  0x7b   : > { %3395 = shalt.err (!%p3392_p2)
}
  0x7c   : > { %p4299_p13 = scmp.ne.s32.totalorder %s4281_s14, 0  ;;  %s2563_s23 = sshll.u32 %s3632_s6, 8 }
  0x7d   : > { %s2710_s8 = sshll.u32 %s3516_s26, 12  ;;  %s274_s18 = scalar_lea.vmem [#allocation8], %s2563_s23 }
  0x7e   : > { %3079 = dma.hbm_to_vmem [thread:$0]  (!%p4299_p13), %s261_s0, 64, %s264_s25, %s3650_s15  }
  0x7f   : > { %s3806_s7 = scalar_lea.hbm %s4254_s3, %s2710_s8  ;;  %s281_s4 = sshll.u32 %s274_s18, 4  ;;  %s3808_s4 = int_to_ptr.vmem [resolvable:$true] %s281_s4 }
  0x80   : > { %s271_s16 = scalar_lea.sflag [#allocation9], %s3632_s6  ;;  %s3396_s11 = scalar_lea.hbm %s3806_s7, 4096 }
  0x81   : > { %p3397_p11 = scmp.ne.s32.totalorder %s3806_s7, %s3396_s11  ;;  %s3401_s25 = scalar_lea.hbm %s4254_s3, 8192 }
  0x82   : > { %p3402_p10 = scmp.lt.u32.totalorder %s3806_s7, %s4254_s3  ;;  %p3403_p4 = scmp.lt.u32.totalorder %s3401_s25, %s3396_s11 }
  0x83   : > { %p3399_p7 = pnand %p3397_p11, %p3656_p8  ;;  %p3405_p1 = scmp.lt.u32.totalorder %s3396_s11, %s3806_s7 }
  0x84   : > { %p3404_p9 = por %p3403_p4, %p3402_p10 }
  0x85   : > { %p3400_p12 = pneg %p3399_p7 }
  0x86   : > { %p3406_p0 = por %p3405_p1, %p3404_p9 }
  0x88   : > { %p3407_p6 = pnand %p3406_p0, %p3400_p12 }
  0x8a   : > { %3410 = shalt.err (!%p3407_p6)
}
  0x8b   : > { %s3411_s13 = scalar_lea.vmem %s3808_s4, 4096  ;;  %s3532_s29 = smov [#allocation8]  }
  0x8c   : > { %p3412_p5 = scmp.ne.s32.totalorder %s3808_s4, %s3411_s13  ;;  %s3416_s5 = sshll.u32 %s3532_s29, 4  ;;  %s3417_s5 = int_to_ptr.vmem [resolvable:$false] %s3416_s5 }
  0x8d   : > { %s3418_s27 = scalar_lea.vmem %s3417_s5, 8192  ;;  %p3419_p11 = scmp.lt.s32.totalorder %s3808_s4, %s3417_s5 }
  0x8e   : > { %p3414_p3 = pnand %p3412_p5, %p3656_p8  ;;  %p3420_p7 = scmp.lt.s32.totalorder %s3418_s27, %s3411_s13 }
  0x90   : > { %p3415_p2 = pneg %p3414_p3  ;;  %p3421_p10 = por %p3420_p7, %p3419_p11 }
  0x92   : > { %p3422_p4 = pnand %p3421_p10, %p3415_p2 }
  0x94   : > { %3425 = shalt.err (!%p3422_p4)
}
  0x95   : > { %s3533_s23 = smov 64   ;;  %s3534_s8 = smov 4  }
  0x96   : > { %3082 = dma.hbm_to_vmem [thread:$0]  (!%p4299_p13), %s3806_s7, 4096, %s3808_s4, %s271_s16, %s3533_s23, %s3533_s23, %s3534_s8  }
  0x97   : > { %p4300_p8 = scmp.ne.s32.totalorder %s4284_s30, 0 }
  0x98   : > { %s4301_s17 = sld [smem:[#allocation13_spill]] (!%p4300_p8)  ;;  %p4302_p12 = scmp.ne.s32.totalorder (!%p4300_p8), %s4289_s9, 0 }
  0x99   : > { %293 = sbr.rel (%p4300_p8) target bundleno = 837 (0x345), region = 40 }
  0x9e   : > { %s295_s10 = sand.u32 (!%p4300_p8), 1, %s4301_s17  }
  0x9f   : > { %s2567_s24 = sshll.u32 (!%p4300_p8), %s295_s10, 9  ;;  %s296_s18 = scalar_lea.sflag (!%p4300_p8), [#allocation4], %s295_s10 }
  0xa0   : > { %s3837_s11 = scalar_lea.vmem [#allocation3], %s2567_s24 }
  0xa1   : > { %3471 = dma.done.wait (%p4302_p12), %s296_s18, 8192  }
  0xa2   : > { %3473 = vsyncadd (%p4302_p12), %s296_s18, 4294959104  ;;  %s4303_s0 = sadd.s32 4294967295, %s3524_s28   ;;  %s306_s14 = sand.u32 1, %s3488_s19  }
  0xa3   : > { %s304_s6 = sand.u32 1, %s4303_s0   ;;  %s2568_s30 = sshll.u32 %s306_s14, 9 }
  0xa4   : > { %s305_s7 = scalar_lea.sflag [#allocation6], %s304_s6  ;;  %s3846_s4 = scalar_lea.vmem [#allocation5], %s2568_s30 }
  0xa5   : > { %p4304_p13 = scmp.ne.s32.totalorder %s4291_s21, 0 }
  0xa7   : > { %3475 = dma.done.wait (%p4304_p13), %s305_s7, 8256  }
  0xa8   : > { %3477 = vsyncadd (%p4304_p13), %s305_s7, 4294959040  ;;  %s2569_s16 = sshll.u32 %s306_s14, 2  ;;  %s2570_s15 = sshll.u32 %s306_s14, 8 }
  0xa9   : > { %s3852_s9 = scalar_lea.vmem [#allocation7], %s2569_s16  ;;  %s323_s25 = scalar_lea.sflag [#allocation9], %s306_s14 }
  0xaa   : > { %s3854_s12 = scalar_lea.vmem [#allocation8], %s2570_s15 }
  0xab   : > { %3479 = dma.done.wait (%p4304_p13), %s323_s25, 4096  }
  0xac   : > { %3481 = vsyncadd (%p4304_p13), %s323_s25, 4294963200  ;;  %s4305_s22 = sld [smem:[#allocation16_spill]]  ;;  %s4307_s17 = sld [smem:[#allocation15_spill]] }
  0xad   : > { %s4306_s23 = sld [smem:[#allocation24_spill]] }
  0xb2   : > { %s2571_s13 = sshll.u32 %s4305_s22, 5  ;;  %p2573_p1 = scmp.ne.s32.totalorder %s4307_s17, 0 }
  0xb3   : > { %p373_p9 = scmp.lt.s32.totalorder %s2571_s13, 63  ;;  %v3535_v0 = vmov (!%p2573_p1), 0.0  }
  0xb4   : > { %382 = sbr.rel (%p2573_p1) target bundleno = 196 (0xc4), region = 60  ;;  %383 = vst [vmem:[#allocation2] sm:$0xff] (!%p2573_p1), %v3535_v0  ;;  %384 = vst [vmem:[#allocation2 + $0x8] sm:$0xff] (!%p2573_p1), %v3535_v0 }
  0xb5   : > { %s4328_s13 = smov (!%p373_p9, %s2571_s13), 63  ;;  %385 = vst [vmem:[#allocation2 + $0x10] sm:$0xff] (!%p2573_p1), %v3535_v0  ;;  %386 = vst [vmem:[#allocation2 + $0x18] sm:$0xff] (!%p2573_p1), %v3535_v0 }
  0xb6   : > { %s2572_s29 = sshll.u32 %s4328_s13, 2  ;;  %387 = vst [vmem:[#allocation2 + $0x20] sm:$0xff] (!%p2573_p1), %v3535_v0  ;;  %388 = vst [vmem:[#allocation2 + $0x28] sm:$0xff] (!%p2573_p1), %v3535_v0 }
  0xb7   : > { %s3864_s8 = scalar_lea.vmem %s4306_s23, %s2572_s29  ;;  %389 = vst [vmem:[#allocation2 + $0x30] sm:$0xff] (!%p2573_p1), %v3535_v0  ;;  %390 = vst [vmem:[#allocation2 + $0x38] sm:$0xff] (!%p2573_p1), %v3535_v0 }
  0xb8   : > { %391 = vst [vmem:[#allocation2 + $0x40] sm:$0xff] (!%p2573_p1), %v3535_v0  ;;  %392 = vst [vmem:[#allocation2 + $0x48] sm:$0xff] (!%p2573_p1), %v3535_v0 }
  0xb9   : > { %393 = vst [vmem:[#allocation2 + $0x50] sm:$0xff] (!%p2573_p1), %v3535_v0  ;;  %394 = vst [vmem:[#allocation2 + $0x58] sm:$0xff] (!%p2573_p1), %v3535_v0 }
  0xba   : > { %395 = vst [vmem:[#allocation2 + $0x60] sm:$0xff] (!%p2573_p1), %v3535_v0  ;;  %396 = vst [vmem:[#allocation2 + $0x68] sm:$0xff] (!%p2573_p1), %v3535_v0 }
  0xbb   : > { %397 = vst [vmem:[#allocation2 + $0x70] sm:$0xff] %v3535_v0  ;;  %398 = vst [vmem:[#allocation2 + $0x78] sm:$0xff] %v3535_v0 }
  0xbc   : > { %399 = vst [vmem:[#allocation2 + $0x80] sm:$0xff] %v3535_v0  ;;  %400 = vst [vmem:[#allocation2 + $0x88] sm:$0xff] %v3535_v0 }
  0xbd   : > { %401 = vst [vmem:[#allocation2 + $0x90] sm:$0xff] %v3535_v0  ;;  %402 = vst [vmem:[#allocation2 + $0x98] sm:$0xff] %v3535_v0 }
  0xbe   : > { %403 = vst [vmem:[#allocation2 + $0xa0] sm:$0xff] %v3535_v0  ;;  %404 = vst [vmem:[#allocation2 + $0xa8] sm:$0xff] %v3535_v0 }
  0xbf   : > { %405 = vst [vmem:[#allocation2 + $0xb0] sm:$0xff] %v3535_v0  ;;  %406 = vst [vmem:[#allocation2 + $0xb8] sm:$0xff] %v3535_v0 }
  0xc0   : > { %407 = vst [vmem:[#allocation2 + $0xc0] sm:$0xff] %v3535_v0  ;;  %408 = vst [vmem:[#allocation2 + $0xc8] sm:$0xff] %v3535_v0 }
  0xc1   : > { %409 = vst [vmem:[#allocation2 + $0xd0] sm:$0xff] %v3535_v0  ;;  %410 = vst [vmem:[#allocation2 + $0xd8] sm:$0xff] %v3535_v0 }
  0xc2   : > { %411 = vst [vmem:[#allocation2 + $0xe0] sm:$0xff] %v3535_v0  ;;  %412 = vst [vmem:[#allocation2 + $0xe8] sm:$0xff] %v3535_v0 }
  0xc3   : > { %413 = vst [vmem:[#allocation2 + $0xf0] sm:$0xff] %v3535_v0  ;;  %414 = vst [vmem:[#allocation2 + $0xf8] sm:$0xff] %v3535_v0 }
  0xc4 PF: > { %v3178_v1 = vld [vmem:[%s3846_s4 + $0x4] ss:$16 sps:$4 sm:$0xff]   ;;  %v3180_v2 = vld [vmem:[%s3846_s4 + $0xc] ss:$16 sps:$4 sm:$0xff]   ;;  %v3182_v3 = vld [vmem:[%s3846_s4] ss:$16 sps:$4 sm:$0xff]  }
  0xc5   : > { %917 = vmatprep.subr.bf16.mxu0 %v3178_v1  ;;  %v3183_v4 = vld [vmem:[%s3846_s4 + $0x8] ss:$16 sps:$4 sm:$0xff]   ;;  %1110 = vmatprep.subr.bf16.mxu1 %v3180_v2  ;;  %v3184_v5 = vld [vmem:[%s3846_s4 + $0x24] ss:$16 sps:$4 sm:$0xff]   ;;  %v3186_v6 = vld [vmem:[%s3846_s4 + $0x2c] ss:$16 sps:$4 sm:$0xff]  }
  0xc6   : > { %918 = vmatpush1.bf16.msra.mxu0 %v3182_v3  ;;  %1111 = vmatpush1.bf16.msra.mxu1 %v3183_v4  ;;  %v3188_v7 = vld [vmem:[%s3846_s4 + $0x20] ss:$16 sps:$4 sm:$0xff]   ;;  %v3189_v8 = vld [vmem:[%s3846_s4 + $0x28] ss:$16 sps:$4 sm:$0xff]   ;;  %v3190_v9 = vld [vmem:[%s3846_s4 + $0x44] ss:$16 sps:$4 sm:$0xff]  }
  0xc7   : > { %919 = vmatprep.subr.bf16.mxu0 %v3184_v5  ;;  %1112 = vmatprep.subr.bf16.mxu1 %v3186_v6  ;;  %v3192_v10 = vld [vmem:[%s3846_s4 + $0x4c] ss:$16 sps:$4 sm:$0xff]   ;;  %v3194_v11 = vld [vmem:[%s3846_s4 + $0x40] ss:$16 sps:$4 sm:$0xff]   ;;  %v3195_v12 = vld [vmem:[%s3846_s4 + $0x48] ss:$16 sps:$4 sm:$0xff]  }
  0xc8   : > { %v3196_v13 = vld [vmem:[%s3846_s4 + $0x64] ss:$16 sps:$4 sm:$0xff]   ;;  %v3198_v14 = vld [vmem:[%s3846_s4 + $0x6c] ss:$16 sps:$4 sm:$0xff]   ;;  %v3200_v15 = vld [vmem:[%s3846_s4 + $0x60] ss:$16 sps:$4 sm:$0xff]  }
  0xc9   : > { %v3201_v16 = vld [vmem:[%s3846_s4 + $0x68] ss:$16 sps:$4 sm:$0xff]   ;;  %v3202_v17 = vld [vmem:[%s3846_s4 + $0x84] ss:$16 sps:$4 sm:$0xff]   ;;  %v3204_v18 = vld [vmem:[%s3846_s4 + $0x8c] ss:$16 sps:$4 sm:$0xff]  }
  0xca   : > { %920 = vmatpush1.bf16.msra.mxu0 %v3188_v7  ;;  %1113 = vmatpush1.bf16.msra.mxu1 %v3189_v8  ;;  %v3206_v19 = vld [vmem:[%s3846_s4 + $0x80] ss:$16 sps:$4 sm:$0xff]   ;;  %v3207_v20 = vld [vmem:[%s3846_s4 + $0x88] ss:$16 sps:$4 sm:$0xff]   ;;  %v3208_v21 = vld [vmem:[%s3846_s4 + $0xa4] ss:$16 sps:$4 sm:$0xff]  }
  0xcb   : > { %921 = vmatprep.subr.bf16.mxu0 %v3190_v9  ;;  %1114 = vmatprep.subr.bf16.mxu1 %v3192_v10  ;;  %v3210_v22 = vld [vmem:[%s3846_s4 + $0xac] ss:$16 sps:$4 sm:$0xff]   ;;  %v3212_v23 = vld [vmem:[%s3846_s4 + $0xa0] ss:$16 sps:$4 sm:$0xff]   ;;  %v3213_v24 = vld [vmem:[%s3846_s4 + $0xa8] ss:$16 sps:$4 sm:$0xff]  }
  0xcc   : > { %v3214_v25 = vld [vmem:[%s3846_s4 + $0xc4] ss:$16 sps:$4 sm:$0xff]   ;;  %v3216_v26 = vld [vmem:[%s3846_s4 + $0xcc] ss:$16 sps:$4 sm:$0xff]   ;;  %v3218_v27 = vld [vmem:[%s3846_s4 + $0xc0] ss:$16 sps:$4 sm:$0xff]  }
  0xcd   : > { %v3219_v28 = vld [vmem:[%s3846_s4 + $0xc8] ss:$16 sps:$4 sm:$0xff]   ;;  %v3220_v29 = vld [vmem:[%s3846_s4 + $0xe4] ss:$16 sps:$4 sm:$0xff]   ;;  %v3222_v30 = vld [vmem:[%s3846_s4 + $0xec] ss:$16 sps:$4 sm:$0xff]  }
  0xce   : > { %922 = vmatpush1.bf16.msra.mxu0 %v3194_v11  ;;  %1115 = vmatpush1.bf16.msra.mxu1 %v3195_v12  ;;  %v3224_v31 = vld [vmem:[%s3846_s4 + $0xe0] ss:$16 sps:$4 sm:$0xff]   ;;  %v3225_v32 = vld [vmem:[%s3846_s4 + $0xe8] ss:$16 sps:$4 sm:$0xff]   ;;  %v3226_v33 = vld [vmem:[%s3846_s4 + $0x104] ss:$16 sps:$4 sm:$0xff]  }
  0xcf   : > { %923 = vmatprep.subr.bf16.mxu0 %v3196_v13  ;;  %1116 = vmatprep.subr.bf16.mxu1 %v3198_v14  ;;  %v3228_v34 = vld [vmem:[%s3846_s4 + $0x10c] ss:$16 sps:$4 sm:$0xff]   ;;  %v3230_v35 = vld [vmem:[%s3846_s4 + $0x100] ss:$16 sps:$4 sm:$0xff]   ;;  %v3231_v36 = vld [vmem:[%s3846_s4 + $0x108] ss:$16 sps:$4 sm:$0xff]  }
  0xd0   : > { %v3232_v37 = vld [vmem:[%s3846_s4 + $0x124] ss:$16 sps:$4 sm:$0xff]   ;;  %v3234_v38 = vld [vmem:[%s3846_s4 + $0x12c] ss:$16 sps:$4 sm:$0xff]   ;;  %v3236_v39 = vld [vmem:[%s3846_s4 + $0x120] ss:$16 sps:$4 sm:$0xff]  }
  0xd1   : > { %v3237_v40 = vld [vmem:[%s3846_s4 + $0x128] ss:$16 sps:$4 sm:$0xff]   ;;  %v3238_v41 = vld [vmem:[%s3846_s4 + $0x144] ss:$16 sps:$4 sm:$0xff]   ;;  %v3240_v42 = vld [vmem:[%s3846_s4 + $0x14c] ss:$16 sps:$4 sm:$0xff]  }
  0xd2   : > { %924 = vmatpush1.bf16.msra.mxu0 %v3200_v15  ;;  %1117 = vmatpush1.bf16.msra.mxu1 %v3201_v16  ;;  %v3242_v43 = vld [vmem:[%s3846_s4 + $0x140] ss:$16 sps:$4 sm:$0xff]   ;;  %v3243_v44 = vld [vmem:[%s3846_s4 + $0x148] ss:$16 sps:$4 sm:$0xff]   ;;  %v3244_v45 = vld [vmem:[%s3846_s4 + $0x164] ss:$16 sps:$4 sm:$0xff]  }
  0xd3   : > { %925 = vmatprep.subr.bf16.mxu0 %v3202_v17  ;;  %1118 = vmatprep.subr.bf16.mxu1 %v3204_v18  ;;  %v3246_v46 = vld [vmem:[%s3846_s4 + $0x16c] ss:$16 sps:$4 sm:$0xff]   ;;  %v3248_v49 = vld [vmem:[%s3846_s4 + $0x160] ss:$16 sps:$4 sm:$0xff]   ;;  %v3249_v50 = vld [vmem:[%s3846_s4 + $0x168] ss:$16 sps:$4 sm:$0xff]  }
  0xd4   : > { %v416_v47 = vld [vmem:[%s3837_s11 + $0x8] sm:$0xff]  ;;  %v418_v48 = vld [vmem:[%s3837_s11 + $0x18] sm:$0xff]  ;;  %v3250_v52 = vld [vmem:[%s3846_s4 + $0x184] ss:$16 sps:$4 sm:$0xff]   ;;  %s4308_s21 = sld [smem:[#allocation15_spill]] }
  0xd5   : > { %v480_v51 = vpack.c.bf16 %v418_v48, %v416_v47  ;;  %v3252_v53 = vld [vmem:[%s3846_s4 + $0x18c] ss:$16 sps:$4 sm:$0xff]   ;;  %v3254_v54 = vld [vmem:[%s3846_s4 + $0x180] ss:$16 sps:$4 sm:$0xff]   ;;  %v3255_v55 = vld [vmem:[%s3846_s4 + $0x188] ss:$16 sps:$4 sm:$0xff]  }
  0xd6   : > { %926 = vmatpush1.bf16.msra.mxu0 %v3206_v19  ;;  %1119 = vmatpush1.bf16.msra.mxu1 %v3207_v20  ;;  %v3256_v56 = vld [vmem:[%s3846_s4 + $0x1a4] ss:$16 sps:$4 sm:$0xff]   ;;  %v3258_v57 = vld [vmem:[%s3846_s4 + $0x1ac] ss:$16 sps:$4 sm:$0xff]   ;;  %v3260_v58 = vld [vmem:[%s3846_s4 + $0x1a0] ss:$16 sps:$4 sm:$0xff]  }
  0xd7   : > { %927 = vmatprep.subr.bf16.mxu0 %v3208_v21  ;;  %1120 = vmatprep.subr.bf16.mxu1 %v3210_v22  ;;  %v3261_v59 = vld [vmem:[%s3846_s4 + $0x1a8] ss:$16 sps:$4 sm:$0xff]   ;;  %v3262_v60 = vld [vmem:[%s3846_s4 + $0x1c4] ss:$16 sps:$4 sm:$0xff]   ;;  %v3264_v61 = vld [vmem:[%s3846_s4 + $0x1cc] ss:$16 sps:$4 sm:$0xff]  }
  0xd8   : > { %949 = vmatprep.mubr.bf16.mxu0 %v480_v51  ;;  %1142 = vmatprep.mubr.bf16.mxu1 %v480_v51  ;;  %v3266_v62 = vld [vmem:[%s3846_s4 + $0x1c0] ss:$16 sps:$4 sm:$0xff]   ;;  %v3267_v63 = vld [vmem:[%s3846_s4 + $0x1c8] ss:$16 sps:$4 sm:$0xff]   ;;  %v3268_v0 = vld [vmem:[%s3846_s4 + $0x1e4] ss:$16 sps:$4 sm:$0xff]  }
  0xd9   : > { %v3270_v1 = vld [vmem:[%s3846_s4 + $0x1ec] ss:$16 sps:$4 sm:$0xff]   ;;  %v3272_v2 = vld [vmem:[%s3846_s4 + $0x1e0] ss:$16 sps:$4 sm:$0xff]   ;;  %v3273_v3 = vld [vmem:[%s3846_s4 + $0x1e8] ss:$16 sps:$4 sm:$0xff]  }
  0xda   : > { %928 = vmatpush1.bf16.msra.mxu0 %v3212_v23  ;;  %1121 = vmatpush1.bf16.msra.mxu1 %v3213_v24  ;;  %v415_v4 = vld [vmem:[%s3837_s11] sm:$0xff]  ;;  %v417_v5 = vld [vmem:[%s3837_s11 + $0x10] sm:$0xff]  ;;  %v420_v6 = vld [vmem:[%s3837_s11 + $0x28] sm:$0xff]  ;;  %p2670_p0 = scmp.ne.s32.totalorder %s4308_s21, 1 }
  0xdb   : > { %929 = vmatprep.subr.bf16.mxu0 %v3214_v25  ;;  %1122 = vmatprep.subr.bf16.mxu1 %v3216_v26  ;;  %v422_v7 = vld [vmem:[%s3837_s11 + $0x38] sm:$0xff]  ;;  %v3274_v8 = vld [vmem:[%s3854_s12 + $0x40] sm:$0xff]   ;;  %v479_v10 = vpack.c.bf16 %v417_v5, %v415_v4  ;;  %v419_v14 = vld [vmem:[%s3837_s11 + $0x20] sm:$0xff]  ;;  %s4309_s18 = sld [smem:[#allocation23_spill]] (!%p2670_p0) }
  0xdc   : > { %v3275_v9 = vld [vmem:[%s3854_s12 + $0xc0] sm:$0xff]   ;;  %v482_v11 = vpack.c.bf16 %v422_v7, %v420_v6  ;;  %v421_v15 = vld [vmem:[%s3837_s11 + $0x30] sm:$0xff]  ;;  %v426_v19 = vld [vmem:[%s3837_s11 + $0x58] sm:$0xff] }
  0xdd   : > { %v3276_v12 = vld [vmem:[%s3854_s12] sm:$0xff]   ;;  %v3278_v16 = vld [vmem:[%s3854_s12 + $0x48] sm:$0xff]   ;;  %v481_v22 = vpack.c.bf16 %v421_v15, %v419_v14  ;;  %v3282_v24 = vld [vmem:[%s3854_s12 + $0x50] sm:$0xff]  }
  0xde   : > { %930 = vmatpush1.bf16.msra.mxu0 %v3218_v27  ;;  %1123 = vmatpush1.bf16.msra.mxu1 %v3219_v28  ;;  %v3277_v13 = vld [vmem:[%s3854_s12 + $0x80] sm:$0xff]   ;;  %v3279_v17 = vld [vmem:[%s3854_s12 + $0xc8] sm:$0xff]   ;;  %v3283_v25 = vld [vmem:[%s3854_s12 + $0xd0] sm:$0xff]  }
  0xdf   : > { %931 = vmatprep.subr.bf16.mxu0 %v3220_v29  ;;  %1124 = vmatprep.subr.bf16.mxu1 %v3222_v30  ;;  %v424_v18 = vld [vmem:[%s3837_s11 + $0x48] sm:$0xff]  ;;  %v3280_v20 = vld [vmem:[%s3854_s12 + $0x8] sm:$0xff]   ;;  %v423_v26 = vld [vmem:[%s3837_s11 + $0x40] sm:$0xff] }
  0xe0   : > { %v3281_v21 = vld [vmem:[%s3854_s12 + $0x88] sm:$0xff]   ;;  %v484_v23 = vpack.c.bf16 %v426_v19, %v424_v18  ;;  %v3284_v28 = vld [vmem:[%s3854_s12 + $0x10] sm:$0xff]   ;;  %v428_v29 = vld [vmem:[%s3837_s11 + $0x68] sm:$0xff] }
  0xe1   : > { %v425_v27 = vld [vmem:[%s3837_s11 + $0x50] sm:$0xff]  ;;  %v430_v30 = vld [vmem:[%s3837_s11 + $0x78] sm:$0xff]  ;;  %v440_v4 = vld [vmem:[%s3837_s11 + $0xc8] sm:$0xff] }
  0xe2   : > { %932 = vmatpush1.bf16.msra.mxu0 %v3224_v31  ;;  %1125 = vmatpush1.bf16.msra.mxu1 %v3225_v32  ;;  %v3285_v31 = vld [vmem:[%s3854_s12 + $0x90] sm:$0xff]   ;;  %v3286_v32 = vld [vmem:[%s3854_s12 + $0x58] sm:$0xff]   ;;  %v3295_v47 = vld [vmem:[%s3854_s12 + $0xe8] sm:$0xff]  }
  0xe3   : > { %933 = vmatprep.subr.bf16.mxu0 %v3226_v33  ;;  %1126 = vmatprep.subr.bf16.mxu1 %v3228_v34  ;;  %v3287_v33 = vld [vmem:[%s3854_s12 + $0xd8] sm:$0xff]   ;;  %v3296_v48 = vld [vmem:[%s3854_s12 + $0x28] sm:$0xff]   ;;  %v442_v5 = vld [vmem:[%s3837_s11 + $0xd8] sm:$0xff] }
  0xe4   : > { %v3288_v34 = vld [vmem:[%s3854_s12 + $0x18] sm:$0xff]   ;;  %v492_v7 = vpack.c.bf16 %v442_v5, %v440_v4  ;;  %v445_v15 = vld [vmem:[%s3837_s11 + $0xf0] sm:$0xff] }
  0xe5   : > { %v443_v14 = vld [vmem:[%s3837_s11 + $0xe0] sm:$0xff] }
  0xe6   : > { %934 = vmatpush1.bf16.msra.mxu0 %v3230_v35  ;;  %1127 = vmatpush1.bf16.msra.mxu1 %v3231_v36  ;;  %v483_v35 = vpack.c.bf16 %v425_v27, %v423_v26  ;;  %v3289_v36 = vld [vmem:[%s3854_s12 + $0x98] sm:$0xff]   ;;  %v493_v18 = vpack.c.bf16 %v445_v15, %v443_v14  ;;  %v453_v27 = vld [vmem:[%s3837_s11 + $0x130] sm:$0xff] }
  0xe7   : > { %935 = vmatprep.subr.bf16.mxu0 %v3232_v37  ;;  %1128 = vmatprep.subr.bf16.mxu1 %v3234_v38  ;;  %v486_v37 = vpack.c.bf16 %v430_v30, %v428_v29  ;;  %v3290_v38 = vld [vmem:[%s3854_s12 + $0x60] sm:$0xff]   ;;  %v451_v26 = vld [vmem:[%s3837_s11 + $0x120] sm:$0xff]  ;;  %v458_v29 = vld [vmem:[%s3837_s11 + $0x158] sm:$0xff] }
  0xe8   : > { %v497_v30 = vpack.c.bf16 %v453_v27, %v451_v26  ;;  %v575_v5 = vld [vmem:[%s3852_s9] sm:$0xf] }
  0xea   : > { %936 = vmatpush1.bf16.msra.mxu0 %v3236_v39  ;;  %1129 = vmatpush1.bf16.msra.mxu1 %v3237_v40  ;;  %v3291_v39 = vld [vmem:[%s3854_s12 + $0xe0] sm:$0xff]   ;;  %v427_v40 = vld [vmem:[%s3837_s11 + $0x60] sm:$0xff] }
  0xeb   : > { %937 = vmatprep.subr.bf16.mxu0 %v3238_v41  ;;  %1130 = vmatprep.subr.bf16.mxu1 %v3240_v42  ;;  %v429_v41 = vld [vmem:[%s3837_s11 + $0x70] sm:$0xff]  ;;  %v3292_v42 = vld [vmem:[%s3854_s12 + $0x20] sm:$0xff]  }
  0xee   : > { %938 = vmatpush1.bf16.msra.mxu0 %v3242_v43  ;;  %1131 = vmatpush1.bf16.msra.mxu1 %v3243_v44  ;;  %v432_v43 = vld [vmem:[%s3837_s11 + $0x88] sm:$0xff]  ;;  %v434_v44 = vld [vmem:[%s3837_s11 + $0x98] sm:$0xff] }
  0xef   : > { %939 = vmatprep.subr.bf16.mxu0 %v3244_v45  ;;  %1132 = vmatprep.subr.bf16.mxu1 %v3246_v46  ;;  %v3293_v45 = vld [vmem:[%s3854_s12 + $0xa0] sm:$0xff]   ;;  %v3294_v46 = vld [vmem:[%s3854_s12 + $0x68] sm:$0xff]   ;;  %v488_v51 = vpack.c.bf16 %v434_v44, %v432_v43  ;;  %v463_v44 = vld [vmem:[%s3837_s11 + $0x180] sm:$0xff] }
  0xf2   : > { %940 = vmatpush1.bf16.msra.mxu0 %v3248_v49  ;;  %1133 = vmatpush1.bf16.msra.mxu1 %v3249_v50  ;;  %v485_v49 = vpack.c.bf16 %v429_v41, %v427_v40  ;;  %v3297_v50 = vld [vmem:[%s3854_s12 + $0xa8] sm:$0xff]   ;;  %v464_v40 = vld [vmem:[%s3837_s11 + $0x188] sm:$0xff]  ;;  %v466_v41 = vld [vmem:[%s3837_s11 + $0x198] sm:$0xff] }
  0xf3   : > { %941 = vmatprep.subr.bf16.mxu0 %v3250_v52  ;;  %1134 = vmatprep.subr.bf16.mxu1 %v3252_v53  ;;  %v3298_v52 = vld [vmem:[%s3854_s12 + $0x70] sm:$0xff]   ;;  %v504_v43 = vpack.c.bf16 %v466_v41, %v464_v40 }
  0xf4   : > { %v3299_v53 = vld [vmem:[%s3854_s12 + $0xf0] sm:$0xff]  }
  0xf6   : > { %942 = vmatpush1.bf16.msra.mxu0 %v3254_v54  ;;  %1135 = vmatpush1.bf16.msra.mxu1 %v3255_v55  ;;  %v431_v54 = vld [vmem:[%s3837_s11 + $0x80] sm:$0xff]  ;;  %v433_v55 = vld [vmem:[%s3837_s11 + $0x90] sm:$0xff] }
  0xf7   : > { %943 = vmatprep.subr.bf16.mxu0 %v3256_v56  ;;  %1136 = vmatprep.subr.bf16.mxu1 %v3258_v57  ;;  %v3300_v56 = vld [vmem:[%s3854_s12 + $0x30] sm:$0xff]   ;;  %v436_v57 = vld [vmem:[%s3837_s11 + $0xa8] sm:$0xff] }
  0xfa   : > { %944 = vmatpush1.bf16.msra.mxu0 %v3260_v58  ;;  %1137 = vmatpush1.bf16.msra.mxu1 %v3261_v59  ;;  %v438_v58 = vld [vmem:[%s3837_s11 + $0xb8] sm:$0xff] }
  0xfb   : > { %945 = vmatprep.subr.bf16.mxu0 %v3262_v60  ;;  %1138 = vmatprep.subr.bf16.mxu1 %v3264_v61  ;;  %v3301_v59 = vld [vmem:[%s3854_s12 + $0xb0] sm:$0xff]   ;;  %v3302_v60 = vld [vmem:[%s3854_s12 + $0x78] sm:$0xff]  }
  0xfc   : > { %v3303_v61 = vld [vmem:[%s3854_s12 + $0xf8] sm:$0xff]  }
  0xfe   : > { %946 = vmatpush1.bf16.msra.mxu0 %v3266_v62  ;;  %1139 = vmatpush1.bf16.msra.mxu1 %v3267_v63  ;;  %v3304_v62 = vld [vmem:[%s3854_s12 + $0x38] sm:$0xff]   ;;  %v487_v63 = vpack.c.bf16 %v433_v55, %v431_v54 }
  0xff   : > { %947 = vmatprep.subr.bf16.mxu0 %v3268_v0  ;;  %1140 = vmatprep.subr.bf16.mxu1 %v3270_v1  ;;  %v3305_v0 = vld [vmem:[%s3854_s12 + $0xb8] sm:$0xff]   ;;  %v490_v1 = vpack.c.bf16 %v438_v58, %v436_v57  ;;  %v473_v57 = vld [vmem:[%s3837_s11 + $0x1d0] sm:$0xff]  ;;  %v476_v58 = vld [vmem:[%s3837_s11 + $0x1e8] sm:$0xff] }
 0x102   : > { %948 = vmatpush1.bf16.msra.mxu0 %v3272_v2  ;;  %1141 = vmatpush1.bf16.msra.mxu1 %v3273_v3  ;;  %v435_v2 = vld [vmem:[%s3837_s11 + $0xa0] sm:$0xff]  ;;  %v437_v3 = vld [vmem:[%s3837_s11 + $0xb0] sm:$0xff] }
 0x103   : > { %2838 = vmatprep.subr.bf16.mxu0 %v3274_v8  ;;  %2950 = vmatprep.subr.bf16.mxu1 %v3275_v9  ;;  %v489_v6 = vpack.c.bf16 %v437_v3, %v435_v2  ;;  %v439_v8 = vld [vmem:[%s3837_s11 + $0xc0] sm:$0xff]  ;;  %v441_v9 = vld [vmem:[%s3837_s11 + $0xd0] sm:$0xff] }
 0x105   : > { %950 = vmatmul.mubr.bf16.vlgmr.msra.gmra.mrb[0].mxu0 %v479_v10  ;;  %1143 = vmatmul.mubr.bf16.vlgmr.msra.gmra.mrb[0].mxu1 %v479_v10  ;;  %v444_v10 = vld [vmem:[%s3837_s11 + $0xe8] sm:$0xff] }
 0x106   : > { %959 = vmatprep.mubr.bf16.mxu0 %v482_v11  ;;  %1152 = vmatprep.mubr.bf16.mxu1 %v482_v11  ;;  %v446_v11 = vld [vmem:[%s3837_s11 + $0xf8] sm:$0xff] }
 0x107   : > { %2839 = vmatpush3.bf16.msra.mxu0 %v3276_v12  ;;  %2951 = vmatpush3.bf16.msra.mxu1 %v3277_v13  ;;  %v491_v12 = vpack.c.bf16 %v441_v9, %v439_v8  ;;  %v494_v13 = vpack.c.bf16 %v446_v11, %v444_v10 }
 0x108   : > { %2840 = vmatprep.subr.bf16.mxu0 %v3278_v16  ;;  %2952 = vmatprep.subr.bf16.mxu1 %v3279_v17  ;;  %v448_v16 = vld [vmem:[%s3837_s11 + $0x108] sm:$0xff]  ;;  %v450_v17 = vld [vmem:[%s3837_s11 + $0x118] sm:$0xff] }
 0x109   : > { %v496_v19 = vpack.c.bf16 %v450_v17, %v448_v16 }
 0x10b   : > { %2841 = vmatpush3.bf16.msra.mxu0 %v3280_v20  ;;  %2953 = vmatpush3.bf16.msra.mxu1 %v3281_v21  ;;  %v447_v20 = vld [vmem:[%s3837_s11 + $0x100] sm:$0xff]  ;;  %v449_v21 = vld [vmem:[%s3837_s11 + $0x110] sm:$0xff] }
 0x10c   : > { %2842 = vmatprep.subr.bf16.mxu0 %v3282_v24  ;;  %2954 = vmatprep.subr.bf16.mxu1 %v3283_v25  ;;  %v495_v24 = vpack.c.bf16 %v449_v21, %v447_v20 }
 0x10d   : > { %960 = vmatmul.mubr.bf16.gmra.mrb[4].mxu0 %v481_v22  ;;  %1153 = vmatmul.mubr.bf16.gmra.mrb[4].mxu1 %v481_v22  ;;  %v452_v22 = vld [vmem:[%s3837_s11 + $0x128] sm:$0xff] }
 0x10e   : > { %969 = vmatprep.mubr.bf16.mxu0 %v484_v23  ;;  %1162 = vmatprep.mubr.bf16.mxu1 %v484_v23  ;;  %v454_v23 = vld [vmem:[%s3837_s11 + $0x138] sm:$0xff] }
 0x10f   : > { %2843 = vmatpush3.bf16.msra.mxu0 %v3284_v28  ;;  %2955 = vmatpush3.bf16.msra.mxu1 %v3285_v31  ;;  %v498_v25 = vpack.c.bf16 %v454_v23, %v452_v22  ;;  %v456_v28 = vld [vmem:[%s3837_s11 + $0x148] sm:$0xff] }
 0x110   : > { %2844 = vmatprep.subr.bf16.mxu0 %v3286_v32  ;;  %2956 = vmatprep.subr.bf16.mxu1 %v3287_v33  ;;  %v500_v31 = vpack.c.bf16 %v458_v29, %v456_v28  ;;  %v455_v32 = vld [vmem:[%s3837_s11 + $0x140] sm:$0xff]  ;;  %v457_v33 = vld [vmem:[%s3837_s11 + $0x150] sm:$0xff] }
 0x113   : > { %2845 = vmatpush3.bf16.msra.mxu0 %v3288_v34  ;;  %2957 = vmatpush3.bf16.msra.mxu1 %v3289_v36  ;;  %v460_v34 = vld [vmem:[%s3837_s11 + $0x168] sm:$0xff]  ;;  %v499_v36 = vpack.c.bf16 %v457_v33, %v455_v32 }
 0x114   : > { %2846 = vmatprep.subr.bf16.mxu0 %v3290_v38  ;;  %2958 = vmatprep.subr.bf16.mxu1 %v3291_v39  ;;  %v459_v38 = vld [vmem:[%s3837_s11 + $0x160] sm:$0xff]  ;;  %v461_v39 = vld [vmem:[%s3837_s11 + $0x170] sm:$0xff] }
 0x115   : > { %970 = vmatmul.mubr.bf16.gmra.mrb[8].mxu0 %v483_v35  ;;  %1163 = vmatmul.mubr.bf16.gmra.mrb[8].mxu1 %v483_v35  ;;  %v462_v35 = vld [vmem:[%s3837_s11 + $0x178] sm:$0xff] }
 0x116   : > { %979 = vmatprep.mubr.bf16.mxu0 %v486_v37  ;;  %1172 = vmatprep.mubr.bf16.mxu1 %v486_v37  ;;  %v502_v37 = vpack.c.bf16 %v462_v35, %v460_v34 }
 0x117   : > { %2847 = vmatpush3.bf16.msra.mxu0 %v3292_v42  ;;  %2959 = vmatpush3.bf16.msra.mxu1 %v3293_v45  ;;  %v501_v42 = vpack.c.bf16 %v461_v39, %v459_v38  ;;  %v465_v45 = vld [vmem:[%s3837_s11 + $0x190] sm:$0xff] }
 0x118   : > { %2848 = vmatprep.subr.bf16.mxu0 %v3294_v46  ;;  %2960 = vmatprep.subr.bf16.mxu1 %v3295_v47  ;;  %v468_v46 = vld [vmem:[%s3837_s11 + $0x1a8] sm:$0xff]  ;;  %v470_v47 = vld [vmem:[%s3837_s11 + $0x1b8] sm:$0xff] }
 0x11b   : > { %2849 = vmatpush3.bf16.msra.mxu0 %v3296_v48  ;;  %2961 = vmatpush3.bf16.msra.mxu1 %v3297_v50  ;;  %v503_v48 = vpack.c.bf16 %v465_v45, %v463_v44  ;;  %v467_v50 = vld [vmem:[%s3837_s11 + $0x1a0] sm:$0xff] }
 0x11c   : > { %2850 = vmatprep.subr.bf16.mxu0 %v3298_v52  ;;  %2962 = vmatprep.subr.bf16.mxu1 %v3299_v53  ;;  %v472_v52 = vld [vmem:[%s3837_s11 + $0x1c8] sm:$0xff]  ;;  %v474_v53 = vld [vmem:[%s3837_s11 + $0x1d8] sm:$0xff] }
 0x11d   : > { %980 = vmatmul.mubr.bf16.gmra.mrb[12].mxu0 %v485_v49  ;;  %1173 = vmatmul.mubr.bf16.gmra.mrb[12].mxu1 %v485_v49  ;;  %v506_v49 = vpack.c.bf16 %v470_v47, %v468_v46  ;;  %v508_v55 = vpack.c.bf16 %v474_v53, %v472_v52 }
 0x11e   : > { %989 = vmatprep.mubr.bf16.mxu0 %v488_v51  ;;  %1182 = vmatprep.mubr.bf16.mxu1 %v488_v51  ;;  %v469_v51 = vld [vmem:[%s3837_s11 + $0x1b0] sm:$0xff] }
 0x11f   : > { %2851 = vmatpush3.bf16.msra.mxu0 %v3300_v56  ;;  %2963 = vmatpush3.bf16.msra.mxu1 %v3301_v59  ;;  %v505_v54 = vpack.c.bf16 %v469_v51, %v467_v50  ;;  %v471_v56 = vld [vmem:[%s3837_s11 + $0x1c0] sm:$0xff]  ;;  %v478_v59 = vld [vmem:[%s3837_s11 + $0x1f8] sm:$0xff] }
 0x120   : > { %2852 = vmatprep.subr.bf16.mxu0 %v3302_v60  ;;  %2964 = vmatprep.subr.bf16.mxu1 %v3303_v61  ;;  %v507_v60 = vpack.c.bf16 %v473_v57, %v471_v56  ;;  %v510_v61 = vpack.c.bf16 %v478_v59, %v476_v58 }
 0x123   : > { %2853 = vmatpush3.bf16.msra.mxu0 %v3304_v62  ;;  %2965 = vmatpush3.bf16.msra.mxu1 %v3305_v0  ;;  %v475_v62 = vld [vmem:[%s3837_s11 + $0x1e0] sm:$0xff] }
 0x125   : > { %990 = vmatmul.mubr.bf16.gmra.mrb[16].mxu0 %v487_v63  ;;  %1183 = vmatmul.mubr.bf16.gmra.mrb[16].mxu1 %v487_v63  ;;  %v477_v63 = vld [vmem:[%s3837_s11 + $0x1f0] sm:$0xff] }
 0x126   : > { %999 = vmatprep.mubr.bf16.mxu0 %v490_v1  ;;  %1192 = vmatprep.mubr.bf16.mxu1 %v490_v1  ;;  %v509_v0 = vpack.c.bf16 %v477_v63, %v475_v62  ;;  %v577_v1 = vlaneseq }
 0x128   : > { %v578_v2 = vshrl.u32 %v577_v1, 7 }
 0x12a   : > { %v579_v3 = vsub.s32 0, %v578_v2  ;;  %v587_v4 = vsub.s32 2, %v578_v2 }
 0x12c   : > { %v4028_v8 = vrot.slane %v575_v5, %v579_v3  ;;  %v4030_v9 = vrot.slane %v575_v5, %v587_v4 }
 0x12d   : > { %1000 = vmatmul.mubr.bf16.gmra.mrb[20].mxu0 %v489_v6  ;;  %1193 = vmatmul.mubr.bf16.gmra.mrb[20].mxu1 %v489_v6  ;;  %v583_v6 = vsub.s32 1, %v578_v2 }
 0x12e   : > { %1009 = vmatprep.mubr.bf16.mxu0 %v492_v7  ;;  %1202 = vmatprep.mubr.bf16.mxu1 %v492_v7  ;;  %v591_v7 = vsub.s32 3, %v578_v2 }
 0x12f   : > { %v4032_v10 = vrot.slane %v575_v5, %v583_v6 }
 0x130   : > { %v4034_v11 = vrot.slane %v575_v5, %v591_v7 }
 0x135   : > { %1010 = vmatmul.mubr.bf16.gmra.mrb[24].mxu0 %v491_v12  ;;  %1203 = vmatmul.mubr.bf16.gmra.mrb[24].mxu1 %v491_v12 }
 0x136   : > { %1019 = vmatprep.mubr.bf16.mxu0 %v494_v13  ;;  %1212 = vmatprep.mubr.bf16.mxu1 %v494_v13 }
 0x13d   : > { %1020 = vmatmul.mubr.bf16.gmra.mrb[28].mxu0 %v493_v18  ;;  %1213 = vmatmul.mubr.bf16.gmra.mrb[28].mxu1 %v493_v18 }
 0x13e   : > { %1029 = vmatprep.mubr.bf16.mxu0 %v496_v19  ;;  %1222 = vmatprep.mubr.bf16.mxu1 %v496_v19 }
 0x145   : > { %1030 = vmatmul.mubr.bf16.gmra.mrb[32].mxu0 %v495_v24  ;;  %1223 = vmatmul.mubr.bf16.gmra.mrb[32].mxu1 %v495_v24 }
 0x146   : > { %1039 = vmatprep.mubr.bf16.mxu0 %v498_v25  ;;  %1232 = vmatprep.mubr.bf16.mxu1 %v498_v25 }
 0x14d   : > { %1040 = vmatmul.mubr.bf16.gmra.mrb[36].mxu0 %v497_v30  ;;  %1233 = vmatmul.mubr.bf16.gmra.mrb[36].mxu1 %v497_v30 }
 0x14e   : > { %1049 = vmatprep.mubr.bf16.mxu0 %v500_v31  ;;  %1242 = vmatprep.mubr.bf16.mxu1 %v500_v31 }
 0x155   : > { %1050 = vmatmul.mubr.bf16.gmra.mrb[40].mxu0 %v499_v36  ;;  %1243 = vmatmul.mubr.bf16.gmra.mrb[40].mxu1 %v499_v36 }
 0x156   : > { %1059 = vmatprep.mubr.bf16.mxu0 %v502_v37  ;;  %1252 = vmatprep.mubr.bf16.mxu1 %v502_v37 }
 0x15d   : > { %1060 = vmatmul.mubr.bf16.gmra.mrb[44].mxu0 %v501_v42  ;;  %1253 = vmatmul.mubr.bf16.gmra.mrb[44].mxu1 %v501_v42 }
 0x15e   : > { %1069 = vmatprep.mubr.bf16.mxu0 %v504_v43  ;;  %1262 = vmatprep.mubr.bf16.mxu1 %v504_v43 }
 0x165   : > { %1070 = vmatmul.mubr.bf16.gmra.mrb[48].mxu0 %v503_v48  ;;  %1263 = vmatmul.mubr.bf16.gmra.mrb[48].mxu1 %v503_v48 }
 0x166   : > { %1079 = vmatprep.mubr.bf16.mxu0 %v506_v49  ;;  %1272 = vmatprep.mubr.bf16.mxu1 %v506_v49 }
 0x16d   : > { %1080 = vmatmul.mubr.bf16.gmra.mrb[52].mxu0 %v505_v54  ;;  %1273 = vmatmul.mubr.bf16.gmra.mrb[52].mxu1 %v505_v54 }
 0x16e   : > { %1089 = vmatprep.mubr.bf16.mxu0 %v508_v55  ;;  %1282 = vmatprep.mubr.bf16.mxu1 %v508_v55 }
 0x175   : > { %1090 = vmatmul.mubr.bf16.gmra.mrb[56].mxu0 %v507_v60  ;;  %1283 = vmatmul.mubr.bf16.gmra.mrb[56].mxu1 %v507_v60 }
 0x176   : > { %1099 = vmatprep.mubr.bf16.mxu0 %v510_v61  ;;  %1292 = vmatprep.mubr.bf16.mxu1 %v510_v61 }
 0x17d   : > { %1100 = vmatmul.mubr.bf16.gmra.mrb[60].mxu0 %v509_v0  ;;  %1293 = vmatmul.mubr.bf16.gmra.mrb[60].mxu1 %v509_v0 }
 0x1d8   : > { %v951_v12 = vpop.f32.mrb[0].mxu0  ;;  %v1144_v13 = vpop.f32.mrb[0].mxu1 }
 0x1d9   : > { %v952_v14 = vadd.f32 %v951_v12, %v4028_v8  ;;  %v1145_v15 = vadd.f32 %v1144_v13, %v4030_v9  ;;  %v953_v16 = vpop.f32.mrb[1].mxu0  ;;  %v1146_v17 = vpop.f32.mrb[1].mxu1 }
 0x1da   : > { %v954_v18 = vadd.f32 %v953_v16, %v4032_v10  ;;  %v1147_v19 = vadd.f32 %v1146_v17, %v4034_v11  ;;  %v955_v20 = vpop.f32.mrb[2].mxu0  ;;  %v1148_v21 = vpop.f32.mrb[2].mxu1 }
 0x1db   : > { %v956_v22 = vadd.f32 %v955_v20, %v4028_v8  ;;  %v1149_v23 = vadd.f32 %v1148_v21, %v4030_v9  ;;  %v957_v24 = vpop.f32.mrb[3].mxu0  ;;  %v1150_v25 = vpop.f32.mrb[3].mxu1  ;;  %v1303_v28 = vmax.f32 %v952_v14, 0.0  ;;  %v1305_v29 = vmax.f32 %v1145_v15, 0.0 }
 0x1dc   : > { %v958_v26 = vadd.f32 %v957_v24, %v4032_v10  ;;  %v1151_v27 = vadd.f32 %v1150_v25, %v4034_v11  ;;  %v1304_v32 = vmax.f32 %v954_v18, 0.0  ;;  %v1306_v33 = vmax.f32 %v1147_v19, 0.0 }
 0x1dd   : > { %v1307_v30 = vmax.f32 %v956_v22, 0.0  ;;  %v1309_v31 = vmax.f32 %v1149_v23, 0.0 }
 0x1de   : > { %v1308_v34 = vmax.f32 %v958_v26, 0.0  ;;  %v1310_v35 = vmax.f32 %v1151_v27, 0.0 }
 0x1df   : > { %v1463_v36 = vpack.c.bf16 %v1307_v30, %v1303_v28  ;;  %v1465_v37 = vpack.c.bf16 %v1309_v31, %v1305_v29 }
 0x1e0   : > { %v1464_v38 = vpack.c.bf16 %v1308_v34, %v1304_v32  ;;  %v1466_v39 = vpack.c.bf16 %v1310_v35, %v1306_v33  ;;  %v961_v40 = vpop.f32.mrb[4].mxu0  ;;  %v1154_v41 = vpop.f32.mrb[4].mxu1 }
 0x1e1   : > { %v962_v42 = vadd.f32 %v961_v40, %v4028_v8  ;;  %v1155_v43 = vadd.f32 %v1154_v41, %v4030_v9  ;;  %v963_v44 = vpop.f32.mrb[5].mxu0  ;;  %v1156_v45 = vpop.f32.mrb[5].mxu1 }
 0x1e2   : > { %v964_v46 = vadd.f32 %v963_v44, %v4032_v10  ;;  %v1157_v47 = vadd.f32 %v1156_v45, %v4034_v11  ;;  %v965_v48 = vpop.f32.mrb[6].mxu0  ;;  %v1158_v49 = vpop.f32.mrb[6].mxu1  ;;  %1815 = vmatprep.mubr.bf16.mxu0 %v1464_v38  ;;  %1976 = vmatprep.mubr.bf16.mxu1 %v1466_v39 }
 0x1e3   : > { %v966_v50 = vadd.f32 %v965_v48, %v4028_v8  ;;  %v1159_v51 = vadd.f32 %v1158_v49, %v4030_v9  ;;  %v967_v52 = vpop.f32.mrb[7].mxu0  ;;  %v1160_v53 = vpop.f32.mrb[7].mxu1  ;;  %1816 = vmatmul.mubr.bf16.vlgmr.msra.gmra.mrb[64].mxu0 %v1463_v36  ;;  %1977 = vmatmul.mubr.bf16.vlgmr.msra.gmra.mrb[64].mxu1 %v1465_v37  ;;  %v1311_v56 = vmax.f32 %v962_v42, 0.0  ;;  %v1313_v57 = vmax.f32 %v1155_v43, 0.0 }
 0x1e4   : > { %v968_v54 = vadd.f32 %v967_v52, %v4032_v10  ;;  %v1161_v55 = vadd.f32 %v1160_v53, %v4034_v11  ;;  %v1312_v60 = vmax.f32 %v964_v46, 0.0  ;;  %v1314_v61 = vmax.f32 %v1157_v47, 0.0 }
 0x1e5   : > { %v1315_v58 = vmax.f32 %v966_v50, 0.0  ;;  %v1317_v59 = vmax.f32 %v1159_v51, 0.0 }
 0x1e6   : > { %v1316_v62 = vmax.f32 %v968_v54, 0.0  ;;  %v1318_v63 = vmax.f32 %v1161_v55, 0.0 }
 0x1e7   : > { %v1467_v0 = vpack.c.bf16 %v1315_v58, %v1311_v56  ;;  %v1469_v1 = vpack.c.bf16 %v1317_v59, %v1313_v57 }
 0x1e8   : > { %v1468_v2 = vpack.c.bf16 %v1316_v62, %v1312_v60  ;;  %v1470_v3 = vpack.c.bf16 %v1318_v63, %v1314_v61  ;;  %v971_v4 = vpop.f32.mrb[8].mxu0  ;;  %v1164_v5 = vpop.f32.mrb[8].mxu1 }
 0x1e9   : > { %v972_v6 = vadd.f32 %v971_v4, %v4028_v8  ;;  %v1165_v7 = vadd.f32 %v1164_v5, %v4030_v9  ;;  %v973_v12 = vpop.f32.mrb[9].mxu0  ;;  %v1166_v13 = vpop.f32.mrb[9].mxu1 }
 0x1ea   : > { %v974_v14 = vadd.f32 %v973_v12, %v4032_v10  ;;  %v1167_v15 = vadd.f32 %v1166_v13, %v4034_v11  ;;  %v975_v16 = vpop.f32.mrb[10].mxu0  ;;  %v1168_v17 = vpop.f32.mrb[10].mxu1  ;;  %1823 = vmatprep.mubr.bf16.mxu0 %v1468_v2  ;;  %1984 = vmatprep.mubr.bf16.mxu1 %v1470_v3 }
 0x1eb   : > { %v976_v18 = vadd.f32 %v975_v16, %v4028_v8  ;;  %v1169_v19 = vadd.f32 %v1168_v17, %v4030_v9  ;;  %v977_v20 = vpop.f32.mrb[11].mxu0  ;;  %v1170_v21 = vpop.f32.mrb[11].mxu1  ;;  %1824 = vmatmul.mubr.bf16.gmra.mrb[68].mxu0 %v1467_v0  ;;  %1985 = vmatmul.mubr.bf16.gmra.mrb[68].mxu1 %v1469_v1  ;;  %v1319_v24 = vmax.f32 %v972_v6, 0.0  ;;  %v1321_v25 = vmax.f32 %v1165_v7, 0.0 }
 0x1ec   : > { %v978_v22 = vadd.f32 %v977_v20, %v4032_v10  ;;  %v1171_v23 = vadd.f32 %v1170_v21, %v4034_v11  ;;  %v1320_v28 = vmax.f32 %v974_v14, 0.0  ;;  %v1322_v29 = vmax.f32 %v1167_v15, 0.0 }
 0x1ed   : > { %v1323_v26 = vmax.f32 %v976_v18, 0.0  ;;  %v1325_v27 = vmax.f32 %v1169_v19, 0.0 }
 0x1ee   : > { %v1324_v30 = vmax.f32 %v978_v22, 0.0  ;;  %v1326_v31 = vmax.f32 %v1171_v23, 0.0 }
 0x1ef   : > { %v1471_v32 = vpack.c.bf16 %v1323_v26, %v1319_v24  ;;  %v1473_v33 = vpack.c.bf16 %v1325_v27, %v1321_v25 }
 0x1f0   : > { %v1472_v34 = vpack.c.bf16 %v1324_v30, %v1320_v28  ;;  %v1474_v35 = vpack.c.bf16 %v1326_v31, %v1322_v29  ;;  %v981_v36 = vpop.f32.mrb[12].mxu0  ;;  %v1174_v37 = vpop.f32.mrb[12].mxu1 }
 0x1f1   : > { %v982_v38 = vadd.f32 %v981_v36, %v4028_v8  ;;  %v1175_v39 = vadd.f32 %v1174_v37, %v4030_v9  ;;  %v983_v40 = vpop.f32.mrb[13].mxu0  ;;  %v1176_v41 = vpop.f32.mrb[13].mxu1 }
 0x1f2   : > { %v984_v42 = vadd.f32 %v983_v40, %v4032_v10  ;;  %v1177_v43 = vadd.f32 %v1176_v41, %v4034_v11  ;;  %v985_v44 = vpop.f32.mrb[14].mxu0  ;;  %v1178_v45 = vpop.f32.mrb[14].mxu1  ;;  %1831 = vmatprep.mubr.bf16.mxu0 %v1472_v34  ;;  %1992 = vmatprep.mubr.bf16.mxu1 %v1474_v35 }
 0x1f3   : > { %v986_v46 = vadd.f32 %v985_v44, %v4028_v8  ;;  %v1179_v47 = vadd.f32 %v1178_v45, %v4030_v9  ;;  %v987_v48 = vpop.f32.mrb[15].mxu0  ;;  %v1180_v49 = vpop.f32.mrb[15].mxu1  ;;  %1832 = vmatmul.mubr.bf16.gmra.mrb[72].mxu0 %v1471_v32  ;;  %1993 = vmatmul.mubr.bf16.gmra.mrb[72].mxu1 %v1473_v33  ;;  %v1327_v52 = vmax.f32 %v982_v38, 0.0  ;;  %v1329_v53 = vmax.f32 %v1175_v39, 0.0 }
 0x1f4   : > { %v988_v50 = vadd.f32 %v987_v48, %v4032_v10  ;;  %v1181_v51 = vadd.f32 %v1180_v49, %v4034_v11  ;;  %v1328_v56 = vmax.f32 %v984_v42, 0.0  ;;  %v1330_v57 = vmax.f32 %v1177_v43, 0.0 }
 0x1f5   : > { %v1331_v54 = vmax.f32 %v986_v46, 0.0  ;;  %v1333_v55 = vmax.f32 %v1179_v47, 0.0 }
 0x1f6   : > { %v1332_v58 = vmax.f32 %v988_v50, 0.0  ;;  %v1334_v59 = vmax.f32 %v1181_v51, 0.0 }
 0x1f7   : > { %v1475_v60 = vpack.c.bf16 %v1331_v54, %v1327_v52  ;;  %v1477_v61 = vpack.c.bf16 %v1333_v55, %v1329_v53 }
 0x1f8   : > { %v1476_v62 = vpack.c.bf16 %v1332_v58, %v1328_v56  ;;  %v1478_v63 = vpack.c.bf16 %v1334_v59, %v1330_v57  ;;  %v991_v0 = vpop.f32.mrb[16].mxu0  ;;  %v1184_v1 = vpop.f32.mrb[16].mxu1 }
 0x1f9   : > { %v992_v2 = vadd.f32 %v991_v0, %v4028_v8  ;;  %v1185_v3 = vadd.f32 %v1184_v1, %v4030_v9  ;;  %v993_v4 = vpop.f32.mrb[17].mxu0  ;;  %v1186_v5 = vpop.f32.mrb[17].mxu1 }
 0x1fa   : > { %v994_v6 = vadd.f32 %v993_v4, %v4032_v10  ;;  %v1187_v7 = vadd.f32 %v1186_v5, %v4034_v11  ;;  %v995_v12 = vpop.f32.mrb[18].mxu0  ;;  %v1188_v13 = vpop.f32.mrb[18].mxu1  ;;  %1839 = vmatprep.mubr.bf16.mxu0 %v1476_v62  ;;  %2000 = vmatprep.mubr.bf16.mxu1 %v1478_v63 }
 0x1fb   : > { %v996_v14 = vadd.f32 %v995_v12, %v4028_v8  ;;  %v1189_v15 = vadd.f32 %v1188_v13, %v4030_v9  ;;  %v997_v16 = vpop.f32.mrb[19].mxu0  ;;  %v1190_v17 = vpop.f32.mrb[19].mxu1  ;;  %1840 = vmatmul.mubr.bf16.gmra.mrb[76].mxu0 %v1475_v60  ;;  %2001 = vmatmul.mubr.bf16.gmra.mrb[76].mxu1 %v1477_v61  ;;  %v1335_v20 = vmax.f32 %v992_v2, 0.0  ;;  %v1337_v21 = vmax.f32 %v1185_v3, 0.0 }
 0x1fc   : > { %v998_v18 = vadd.f32 %v997_v16, %v4032_v10  ;;  %v1191_v19 = vadd.f32 %v1190_v17, %v4034_v11  ;;  %v1336_v24 = vmax.f32 %v994_v6, 0.0  ;;  %v1338_v25 = vmax.f32 %v1187_v7, 0.0 }
 0x1fd   : > { %v1339_v22 = vmax.f32 %v996_v14, 0.0  ;;  %v1341_v23 = vmax.f32 %v1189_v15, 0.0 }
 0x1fe   : > { %v1340_v26 = vmax.f32 %v998_v18, 0.0  ;;  %v1342_v27 = vmax.f32 %v1191_v19, 0.0 }
 0x1ff   : > { %v1479_v28 = vpack.c.bf16 %v1339_v22, %v1335_v20  ;;  %v1481_v29 = vpack.c.bf16 %v1341_v23, %v1337_v21 }
 0x200   : > { %v1480_v30 = vpack.c.bf16 %v1340_v26, %v1336_v24  ;;  %v1482_v31 = vpack.c.bf16 %v1342_v27, %v1338_v25  ;;  %v1001_v32 = vpop.f32.mrb[20].mxu0  ;;  %v1194_v33 = vpop.f32.mrb[20].mxu1 }
 0x201   : > { %v1002_v34 = vadd.f32 %v1001_v32, %v4028_v8  ;;  %v1195_v35 = vadd.f32 %v1194_v33, %v4030_v9  ;;  %v1003_v36 = vpop.f32.mrb[21].mxu0  ;;  %v1196_v37 = vpop.f32.mrb[21].mxu1 }
 0x202   : > { %v1004_v38 = vadd.f32 %v1003_v36, %v4032_v10  ;;  %v1197_v39 = vadd.f32 %v1196_v37, %v4034_v11  ;;  %v1005_v40 = vpop.f32.mrb[22].mxu0  ;;  %v1198_v41 = vpop.f32.mrb[22].mxu1  ;;  %1847 = vmatprep.mubr.bf16.mxu0 %v1480_v30  ;;  %2008 = vmatprep.mubr.bf16.mxu1 %v1482_v31 }
 0x203   : > { %v1006_v42 = vadd.f32 %v1005_v40, %v4028_v8  ;;  %v1199_v43 = vadd.f32 %v1198_v41, %v4030_v9  ;;  %v1007_v44 = vpop.f32.mrb[23].mxu0  ;;  %v1200_v45 = vpop.f32.mrb[23].mxu1  ;;  %1848 = vmatmul.mubr.bf16.gmra.mrb[80].mxu0 %v1479_v28  ;;  %2009 = vmatmul.mubr.bf16.gmra.mrb[80].mxu1 %v1481_v29  ;;  %v1343_v48 = vmax.f32 %v1002_v34, 0.0  ;;  %v1345_v49 = vmax.f32 %v1195_v35, 0.0 }
 0x204   : > { %v1008_v46 = vadd.f32 %v1007_v44, %v4032_v10  ;;  %v1201_v47 = vadd.f32 %v1200_v45, %v4034_v11  ;;  %v1344_v52 = vmax.f32 %v1004_v38, 0.0  ;;  %v1346_v53 = vmax.f32 %v1197_v39, 0.0 }
 0x205   : > { %v1347_v50 = vmax.f32 %v1006_v42, 0.0  ;;  %v1349_v51 = vmax.f32 %v1199_v43, 0.0 }
 0x206   : > { %v1348_v54 = vmax.f32 %v1008_v46, 0.0  ;;  %v1350_v55 = vmax.f32 %v1201_v47, 0.0 }
 0x207   : > { %v1483_v56 = vpack.c.bf16 %v1347_v50, %v1343_v48  ;;  %v1485_v57 = vpack.c.bf16 %v1349_v51, %v1345_v49 }
 0x208   : > { %v1484_v58 = vpack.c.bf16 %v1348_v54, %v1344_v52  ;;  %v1486_v59 = vpack.c.bf16 %v1350_v55, %v1346_v53  ;;  %v1011_v60 = vpop.f32.mrb[24].mxu0  ;;  %v1204_v61 = vpop.f32.mrb[24].mxu1 }
 0x209   : > { %v1012_v62 = vadd.f32 %v1011_v60, %v4028_v8  ;;  %v1205_v63 = vadd.f32 %v1204_v61, %v4030_v9  ;;  %v1013_v0 = vpop.f32.mrb[25].mxu0  ;;  %v1206_v1 = vpop.f32.mrb[25].mxu1 }
 0x20a   : > { %v1014_v2 = vadd.f32 %v1013_v0, %v4032_v10  ;;  %v1207_v3 = vadd.f32 %v1206_v1, %v4034_v11  ;;  %v1015_v4 = vpop.f32.mrb[26].mxu0  ;;  %v1208_v5 = vpop.f32.mrb[26].mxu1  ;;  %1855 = vmatprep.mubr.bf16.mxu0 %v1484_v58  ;;  %2016 = vmatprep.mubr.bf16.mxu1 %v1486_v59 }
 0x20b   : > { %v1016_v6 = vadd.f32 %v1015_v4, %v4028_v8  ;;  %v1209_v7 = vadd.f32 %v1208_v5, %v4030_v9  ;;  %v1017_v12 = vpop.f32.mrb[27].mxu0  ;;  %v1210_v13 = vpop.f32.mrb[27].mxu1  ;;  %1856 = vmatmul.mubr.bf16.gmra.mrb[84].mxu0 %v1483_v56  ;;  %2017 = vmatmul.mubr.bf16.gmra.mrb[84].mxu1 %v1485_v57  ;;  %v1351_v16 = vmax.f32 %v1012_v62, 0.0  ;;  %v1353_v17 = vmax.f32 %v1205_v63, 0.0 }
 0x20c   : > { %v1018_v14 = vadd.f32 %v1017_v12, %v4032_v10  ;;  %v1211_v15 = vadd.f32 %v1210_v13, %v4034_v11  ;;  %v1352_v20 = vmax.f32 %v1014_v2, 0.0  ;;  %v1354_v21 = vmax.f32 %v1207_v3, 0.0 }
 0x20d   : > { %v1355_v18 = vmax.f32 %v1016_v6, 0.0  ;;  %v1357_v19 = vmax.f32 %v1209_v7, 0.0 }
 0x20e   : > { %v1356_v22 = vmax.f32 %v1018_v14, 0.0  ;;  %v1358_v23 = vmax.f32 %v1211_v15, 0.0 }
 0x20f   : > { %v1487_v24 = vpack.c.bf16 %v1355_v18, %v1351_v16  ;;  %v1489_v25 = vpack.c.bf16 %v1357_v19, %v1353_v17 }
 0x210   : > { %v1488_v26 = vpack.c.bf16 %v1356_v22, %v1352_v20  ;;  %v1490_v27 = vpack.c.bf16 %v1358_v23, %v1354_v21  ;;  %v1021_v28 = vpop.f32.mrb[28].mxu0  ;;  %v1214_v29 = vpop.f32.mrb[28].mxu1 }
 0x211   : > { %v1022_v30 = vadd.f32 %v1021_v28, %v4028_v8  ;;  %v1215_v31 = vadd.f32 %v1214_v29, %v4030_v9  ;;  %v1023_v32 = vpop.f32.mrb[29].mxu0  ;;  %v1216_v33 = vpop.f32.mrb[29].mxu1 }
 0x212   : > { %v1024_v34 = vadd.f32 %v1023_v32, %v4032_v10  ;;  %v1217_v35 = vadd.f32 %v1216_v33, %v4034_v11  ;;  %v1025_v36 = vpop.f32.mrb[30].mxu0  ;;  %v1218_v37 = vpop.f32.mrb[30].mxu1  ;;  %1863 = vmatprep.mubr.bf16.mxu0 %v1488_v26  ;;  %2024 = vmatprep.mubr.bf16.mxu1 %v1490_v27 }
 0x213   : > { %v1026_v38 = vadd.f32 %v1025_v36, %v4028_v8  ;;  %v1219_v39 = vadd.f32 %v1218_v37, %v4030_v9  ;;  %v1027_v40 = vpop.f32.mrb[31].mxu0  ;;  %v1220_v41 = vpop.f32.mrb[31].mxu1  ;;  %1864 = vmatmul.mubr.bf16.gmra.mrb[88].mxu0 %v1487_v24  ;;  %2025 = vmatmul.mubr.bf16.gmra.mrb[88].mxu1 %v1489_v25  ;;  %v1359_v44 = vmax.f32 %v1022_v30, 0.0  ;;  %v1361_v45 = vmax.f32 %v1215_v31, 0.0 }
 0x214   : > { %v1028_v42 = vadd.f32 %v1027_v40, %v4032_v10  ;;  %v1221_v43 = vadd.f32 %v1220_v41, %v4034_v11  ;;  %v1360_v48 = vmax.f32 %v1024_v34, 0.0  ;;  %v1362_v49 = vmax.f32 %v1217_v35, 0.0 }
 0x215   : > { %v1363_v46 = vmax.f32 %v1026_v38, 0.0  ;;  %v1365_v47 = vmax.f32 %v1219_v39, 0.0 }
 0x216   : > { %v1364_v50 = vmax.f32 %v1028_v42, 0.0  ;;  %v1366_v51 = vmax.f32 %v1221_v43, 0.0 }
 0x217   : > { %v1491_v52 = vpack.c.bf16 %v1363_v46, %v1359_v44  ;;  %v1493_v53 = vpack.c.bf16 %v1365_v47, %v1361_v45 }
 0x218   : > { %v1492_v54 = vpack.c.bf16 %v1364_v50, %v1360_v48  ;;  %v1494_v55 = vpack.c.bf16 %v1366_v51, %v1362_v49  ;;  %v1031_v56 = vpop.f32.mrb[32].mxu0  ;;  %v1224_v57 = vpop.f32.mrb[32].mxu1 }
 0x219   : > { %v1032_v58 = vadd.f32 %v1031_v56, %v4028_v8  ;;  %v1225_v59 = vadd.f32 %v1224_v57, %v4030_v9  ;;  %v1033_v60 = vpop.f32.mrb[33].mxu0  ;;  %v1226_v61 = vpop.f32.mrb[33].mxu1 }
 0x21a   : > { %v1034_v62 = vadd.f32 %v1033_v60, %v4032_v10  ;;  %v1227_v63 = vadd.f32 %v1226_v61, %v4034_v11  ;;  %v1035_v0 = vpop.f32.mrb[34].mxu0  ;;  %v1228_v1 = vpop.f32.mrb[34].mxu1  ;;  %1871 = vmatprep.mubr.bf16.mxu0 %v1492_v54  ;;  %2032 = vmatprep.mubr.bf16.mxu1 %v1494_v55 }
 0x21b   : > { %v1036_v2 = vadd.f32 %v1035_v0, %v4028_v8  ;;  %v1229_v3 = vadd.f32 %v1228_v1, %v4030_v9  ;;  %v1037_v4 = vpop.f32.mrb[35].mxu0  ;;  %v1230_v5 = vpop.f32.mrb[35].mxu1  ;;  %1872 = vmatmul.mubr.bf16.gmra.mrb[92].mxu0 %v1491_v52  ;;  %2033 = vmatmul.mubr.bf16.gmra.mrb[92].mxu1 %v1493_v53  ;;  %v1367_v12 = vmax.f32 %v1032_v58, 0.0  ;;  %v1369_v13 = vmax.f32 %v1225_v59, 0.0 }
 0x21c   : > { %v1038_v6 = vadd.f32 %v1037_v4, %v4032_v10  ;;  %v1231_v7 = vadd.f32 %v1230_v5, %v4034_v11  ;;  %v1368_v16 = vmax.f32 %v1034_v62, 0.0  ;;  %v1370_v17 = vmax.f32 %v1227_v63, 0.0 }
 0x21d   : > { %v1371_v14 = vmax.f32 %v1036_v2, 0.0  ;;  %v1373_v15 = vmax.f32 %v1229_v3, 0.0 }
 0x21e   : > { %v1372_v18 = vmax.f32 %v1038_v6, 0.0  ;;  %v1374_v19 = vmax.f32 %v1231_v7, 0.0 }
 0x21f   : > { %v1495_v20 = vpack.c.bf16 %v1371_v14, %v1367_v12  ;;  %v1497_v21 = vpack.c.bf16 %v1373_v15, %v1369_v13 }
 0x220   : > { %v1496_v22 = vpack.c.bf16 %v1372_v18, %v1368_v16  ;;  %v1498_v23 = vpack.c.bf16 %v1374_v19, %v1370_v17  ;;  %v1041_v24 = vpop.f32.mrb[36].mxu0  ;;  %v1234_v25 = vpop.f32.mrb[36].mxu1 }
 0x221   : > { %v1042_v26 = vadd.f32 %v1041_v24, %v4028_v8  ;;  %v1235_v27 = vadd.f32 %v1234_v25, %v4030_v9  ;;  %v1043_v28 = vpop.f32.mrb[37].mxu0  ;;  %v1236_v29 = vpop.f32.mrb[37].mxu1 }
 0x222   : > { %v1044_v30 = vadd.f32 %v1043_v28, %v4032_v10  ;;  %v1237_v31 = vadd.f32 %v1236_v29, %v4034_v11  ;;  %v1045_v32 = vpop.f32.mrb[38].mxu0  ;;  %v1238_v33 = vpop.f32.mrb[38].mxu1  ;;  %1879 = vmatprep.mubr.bf16.mxu0 %v1496_v22  ;;  %2040 = vmatprep.mubr.bf16.mxu1 %v1498_v23 }
 0x223   : > { %v1046_v34 = vadd.f32 %v1045_v32, %v4028_v8  ;;  %v1239_v35 = vadd.f32 %v1238_v33, %v4030_v9  ;;  %v1047_v36 = vpop.f32.mrb[39].mxu0  ;;  %v1240_v37 = vpop.f32.mrb[39].mxu1  ;;  %1880 = vmatmul.mubr.bf16.gmra.mrb[96].mxu0 %v1495_v20  ;;  %2041 = vmatmul.mubr.bf16.gmra.mrb[96].mxu1 %v1497_v21  ;;  %v1375_v40 = vmax.f32 %v1042_v26, 0.0  ;;  %v1377_v41 = vmax.f32 %v1235_v27, 0.0 }
 0x224   : > { %v1048_v38 = vadd.f32 %v1047_v36, %v4032_v10  ;;  %v1241_v39 = vadd.f32 %v1240_v37, %v4034_v11  ;;  %v1376_v44 = vmax.f32 %v1044_v30, 0.0  ;;  %v1378_v45 = vmax.f32 %v1237_v31, 0.0 }
 0x225   : > { %v1379_v42 = vmax.f32 %v1046_v34, 0.0  ;;  %v1381_v43 = vmax.f32 %v1239_v35, 0.0 }
 0x226   : > { %v1380_v46 = vmax.f32 %v1048_v38, 0.0  ;;  %v1382_v47 = vmax.f32 %v1241_v39, 0.0 }
 0x227   : > { %v1499_v48 = vpack.c.bf16 %v1379_v42, %v1375_v40  ;;  %v1501_v49 = vpack.c.bf16 %v1381_v43, %v1377_v41 }
 0x228   : > { %v1500_v50 = vpack.c.bf16 %v1380_v46, %v1376_v44  ;;  %v1502_v51 = vpack.c.bf16 %v1382_v47, %v1378_v45  ;;  %v1051_v52 = vpop.f32.mrb[40].mxu0  ;;  %v1244_v53 = vpop.f32.mrb[40].mxu1 }
 0x229   : > { %v1052_v54 = vadd.f32 %v1051_v52, %v4028_v8  ;;  %v1245_v55 = vadd.f32 %v1244_v53, %v4030_v9  ;;  %v1053_v56 = vpop.f32.mrb[41].mxu0  ;;  %v1246_v57 = vpop.f32.mrb[41].mxu1 }
 0x22a   : > { %v1054_v58 = vadd.f32 %v1053_v56, %v4032_v10  ;;  %v1247_v59 = vadd.f32 %v1246_v57, %v4034_v11  ;;  %v1055_v60 = vpop.f32.mrb[42].mxu0  ;;  %v1248_v61 = vpop.f32.mrb[42].mxu1  ;;  %1887 = vmatprep.mubr.bf16.mxu0 %v1500_v50  ;;  %2048 = vmatprep.mubr.bf16.mxu1 %v1502_v51 }
 0x22b   : > { %v1056_v62 = vadd.f32 %v1055_v60, %v4028_v8  ;;  %v1249_v63 = vadd.f32 %v1248_v61, %v4030_v9  ;;  %v1057_v0 = vpop.f32.mrb[43].mxu0  ;;  %v1250_v1 = vpop.f32.mrb[43].mxu1  ;;  %1888 = vmatmul.mubr.bf16.gmra.mrb[100].mxu0 %v1499_v48  ;;  %2049 = vmatmul.mubr.bf16.gmra.mrb[100].mxu1 %v1501_v49  ;;  %v1383_v4 = vmax.f32 %v1052_v54, 0.0  ;;  %v1385_v5 = vmax.f32 %v1245_v55, 0.0 }
 0x22c   : > { %v1058_v2 = vadd.f32 %v1057_v0, %v4032_v10  ;;  %v1251_v3 = vadd.f32 %v1250_v1, %v4034_v11  ;;  %v1384_v12 = vmax.f32 %v1054_v58, 0.0  ;;  %v1386_v13 = vmax.f32 %v1247_v59, 0.0 }
 0x22d   : > { %v1387_v6 = vmax.f32 %v1056_v62, 0.0  ;;  %v1389_v7 = vmax.f32 %v1249_v63, 0.0 }
 0x22e   : > { %v1388_v14 = vmax.f32 %v1058_v2, 0.0  ;;  %v1390_v15 = vmax.f32 %v1251_v3, 0.0 }
 0x22f   : > { %v1503_v16 = vpack.c.bf16 %v1387_v6, %v1383_v4  ;;  %v1505_v17 = vpack.c.bf16 %v1389_v7, %v1385_v5 }
 0x230   : > { %v1504_v18 = vpack.c.bf16 %v1388_v14, %v1384_v12  ;;  %v1506_v19 = vpack.c.bf16 %v1390_v15, %v1386_v13  ;;  %v1061_v20 = vpop.f32.mrb[44].mxu0  ;;  %v1254_v21 = vpop.f32.mrb[44].mxu1 }
 0x231   : > { %v1062_v22 = vadd.f32 %v1061_v20, %v4028_v8  ;;  %v1255_v23 = vadd.f32 %v1254_v21, %v4030_v9  ;;  %v1063_v24 = vpop.f32.mrb[45].mxu0  ;;  %v1256_v25 = vpop.f32.mrb[45].mxu1 }
 0x232   : > { %v1064_v26 = vadd.f32 %v1063_v24, %v4032_v10  ;;  %v1257_v27 = vadd.f32 %v1256_v25, %v4034_v11  ;;  %v1065_v28 = vpop.f32.mrb[46].mxu0  ;;  %v1258_v29 = vpop.f32.mrb[46].mxu1  ;;  %1895 = vmatprep.mubr.bf16.mxu0 %v1504_v18  ;;  %2056 = vmatprep.mubr.bf16.mxu1 %v1506_v19 }
 0x233   : > { %v1066_v30 = vadd.f32 %v1065_v28, %v4028_v8  ;;  %v1259_v31 = vadd.f32 %v1258_v29, %v4030_v9  ;;  %v1067_v32 = vpop.f32.mrb[47].mxu0  ;;  %v1260_v33 = vpop.f32.mrb[47].mxu1  ;;  %1896 = vmatmul.mubr.bf16.gmra.mrb[104].mxu0 %v1503_v16  ;;  %2057 = vmatmul.mubr.bf16.gmra.mrb[104].mxu1 %v1505_v17  ;;  %v1391_v36 = vmax.f32 %v1062_v22, 0.0  ;;  %v1393_v37 = vmax.f32 %v1255_v23, 0.0 }
 0x234   : > { %v1068_v34 = vadd.f32 %v1067_v32, %v4032_v10  ;;  %v1261_v35 = vadd.f32 %v1260_v33, %v4034_v11  ;;  %v1392_v40 = vmax.f32 %v1064_v26, 0.0  ;;  %v1394_v41 = vmax.f32 %v1257_v27, 0.0 }
 0x235   : > { %v1395_v38 = vmax.f32 %v1066_v30, 0.0  ;;  %v1397_v39 = vmax.f32 %v1259_v31, 0.0 }
 0x236   : > { %v1396_v42 = vmax.f32 %v1068_v34, 0.0  ;;  %v1398_v43 = vmax.f32 %v1261_v35, 0.0 }
 0x237   : > { %v1507_v44 = vpack.c.bf16 %v1395_v38, %v1391_v36  ;;  %v1509_v45 = vpack.c.bf16 %v1397_v39, %v1393_v37 }
 0x238   : > { %v1508_v46 = vpack.c.bf16 %v1396_v42, %v1392_v40  ;;  %v1510_v47 = vpack.c.bf16 %v1398_v43, %v1394_v41  ;;  %v1071_v48 = vpop.f32.mrb[48].mxu0  ;;  %v1264_v49 = vpop.f32.mrb[48].mxu1 }
 0x239   : > { %v1072_v50 = vadd.f32 %v1071_v48, %v4028_v8  ;;  %v1265_v51 = vadd.f32 %v1264_v49, %v4030_v9  ;;  %v1073_v52 = vpop.f32.mrb[49].mxu0  ;;  %v1266_v53 = vpop.f32.mrb[49].mxu1 }
 0x23a   : > { %v1074_v54 = vadd.f32 %v1073_v52, %v4032_v10  ;;  %v1267_v55 = vadd.f32 %v1266_v53, %v4034_v11  ;;  %v1075_v56 = vpop.f32.mrb[50].mxu0  ;;  %v1268_v57 = vpop.f32.mrb[50].mxu1  ;;  %1903 = vmatprep.mubr.bf16.mxu0 %v1508_v46  ;;  %2064 = vmatprep.mubr.bf16.mxu1 %v1510_v47 }
 0x23b   : > { %v1076_v58 = vadd.f32 %v1075_v56, %v4028_v8  ;;  %v1269_v59 = vadd.f32 %v1268_v57, %v4030_v9  ;;  %v1077_v60 = vpop.f32.mrb[51].mxu0  ;;  %v1270_v61 = vpop.f32.mrb[51].mxu1  ;;  %1904 = vmatmul.mubr.bf16.gmra.mrb[108].mxu0 %v1507_v44  ;;  %2065 = vmatmul.mubr.bf16.gmra.mrb[108].mxu1 %v1509_v45  ;;  %v1399_v0 = vmax.f32 %v1072_v50, 0.0  ;;  %v1401_v1 = vmax.f32 %v1265_v51, 0.0 }
 0x23c   : > { %v1078_v62 = vadd.f32 %v1077_v60, %v4032_v10  ;;  %v1271_v63 = vadd.f32 %v1270_v61, %v4034_v11  ;;  %v1400_v4 = vmax.f32 %v1074_v54, 0.0  ;;  %v1402_v5 = vmax.f32 %v1267_v55, 0.0 }
 0x23d   : > { %v1403_v2 = vmax.f32 %v1076_v58, 0.0  ;;  %v1405_v3 = vmax.f32 %v1269_v59, 0.0 }
 0x23e   : > { %v1404_v6 = vmax.f32 %v1078_v62, 0.0  ;;  %v1406_v7 = vmax.f32 %v1271_v63, 0.0 }
 0x23f   : > { %v1511_v12 = vpack.c.bf16 %v1403_v2, %v1399_v0  ;;  %v1513_v13 = vpack.c.bf16 %v1405_v3, %v1401_v1 }
 0x240   : > { %v1512_v14 = vpack.c.bf16 %v1404_v6, %v1400_v4  ;;  %v1514_v15 = vpack.c.bf16 %v1406_v7, %v1402_v5  ;;  %v1081_v16 = vpop.f32.mrb[52].mxu0  ;;  %v1274_v17 = vpop.f32.mrb[52].mxu1 }
 0x241   : > { %v1082_v18 = vadd.f32 %v1081_v16, %v4028_v8  ;;  %v1275_v19 = vadd.f32 %v1274_v17, %v4030_v9  ;;  %v1083_v20 = vpop.f32.mrb[53].mxu0  ;;  %v1276_v21 = vpop.f32.mrb[53].mxu1 }
 0x242   : > { %v1084_v22 = vadd.f32 %v1083_v20, %v4032_v10  ;;  %v1277_v23 = vadd.f32 %v1276_v21, %v4034_v11  ;;  %v1085_v24 = vpop.f32.mrb[54].mxu0  ;;  %v1278_v25 = vpop.f32.mrb[54].mxu1  ;;  %1911 = vmatprep.mubr.bf16.mxu0 %v1512_v14  ;;  %2072 = vmatprep.mubr.bf16.mxu1 %v1514_v15 }
 0x243   : > { %v1086_v26 = vadd.f32 %v1085_v24, %v4028_v8  ;;  %v1279_v27 = vadd.f32 %v1278_v25, %v4030_v9  ;;  %v1087_v28 = vpop.f32.mrb[55].mxu0  ;;  %v1280_v29 = vpop.f32.mrb[55].mxu1  ;;  %1912 = vmatmul.mubr.bf16.gmra.mrb[112].mxu0 %v1511_v12  ;;  %2073 = vmatmul.mubr.bf16.gmra.mrb[112].mxu1 %v1513_v13  ;;  %v1407_v32 = vmax.f32 %v1082_v18, 0.0  ;;  %v1409_v33 = vmax.f32 %v1275_v19, 0.0 }
 0x244   : > { %v1088_v30 = vadd.f32 %v1087_v28, %v4032_v10  ;;  %v1281_v31 = vadd.f32 %v1280_v29, %v4034_v11  ;;  %v1408_v36 = vmax.f32 %v1084_v22, 0.0  ;;  %v1410_v37 = vmax.f32 %v1277_v23, 0.0 }
 0x245   : > { %v1411_v34 = vmax.f32 %v1086_v26, 0.0  ;;  %v1413_v35 = vmax.f32 %v1279_v27, 0.0 }
 0x246   : > { %v1412_v38 = vmax.f32 %v1088_v30, 0.0  ;;  %v1414_v39 = vmax.f32 %v1281_v31, 0.0 }
 0x247   : > { %v1515_v40 = vpack.c.bf16 %v1411_v34, %v1407_v32  ;;  %v1517_v41 = vpack.c.bf16 %v1413_v35, %v1409_v33 }
 0x248   : > { %v1516_v42 = vpack.c.bf16 %v1412_v38, %v1408_v36  ;;  %v1518_v43 = vpack.c.bf16 %v1414_v39, %v1410_v37  ;;  %v1091_v44 = vpop.f32.mrb[56].mxu0  ;;  %v1284_v45 = vpop.f32.mrb[56].mxu1 }
 0x249   : > { %v1092_v46 = vadd.f32 %v1091_v44, %v4028_v8  ;;  %v1285_v47 = vadd.f32 %v1284_v45, %v4030_v9  ;;  %v1093_v48 = vpop.f32.mrb[57].mxu0  ;;  %v1286_v49 = vpop.f32.mrb[57].mxu1  ;;  %v1431_v44 = vld [vmem:[#allocation2] sm:$0xff] }
 0x24a   : > { %v1094_v50 = vadd.f32 %v1093_v48, %v4032_v10  ;;  %v1287_v51 = vadd.f32 %v1286_v49, %v4034_v11  ;;  %v1095_v52 = vpop.f32.mrb[58].mxu0  ;;  %v1288_v53 = vpop.f32.mrb[58].mxu1  ;;  %1919 = vmatprep.mubr.bf16.mxu0 %v1516_v42  ;;  %2080 = vmatprep.mubr.bf16.mxu1 %v1518_v43 }
 0x24b   : > { %v1096_v54 = vadd.f32 %v1095_v52, %v4028_v8  ;;  %v1289_v55 = vadd.f32 %v1288_v53, %v4030_v9  ;;  %v1097_v56 = vpop.f32.mrb[59].mxu0  ;;  %v1290_v57 = vpop.f32.mrb[59].mxu1  ;;  %1920 = vmatmul.mubr.bf16.gmra.mrb[116].mxu0 %v1515_v40  ;;  %2081 = vmatmul.mubr.bf16.gmra.mrb[116].mxu1 %v1517_v41  ;;  %v1415_v60 = vmax.f32 %v1092_v46, 0.0  ;;  %v1417_v61 = vmax.f32 %v1285_v47, 0.0 }
 0x24c   : > { %v1098_v58 = vadd.f32 %v1097_v56, %v4032_v10  ;;  %v1291_v59 = vadd.f32 %v1290_v57, %v4034_v11  ;;  %v1416_v0 = vmax.f32 %v1094_v50, 0.0  ;;  %v1418_v1 = vmax.f32 %v1287_v51, 0.0  ;;  %v1432_v50 = vld [vmem:[#allocation2 + $0x8] sm:$0xff] }
 0x24d   : > { %v1419_v62 = vmax.f32 %v1096_v54, 0.0  ;;  %v1421_v63 = vmax.f32 %v1289_v55, 0.0 }
 0x24e   : > { %v1420_v2 = vmax.f32 %v1098_v58, 0.0  ;;  %v1422_v3 = vmax.f32 %v1291_v59, 0.0 }
 0x24f   : > { %v1519_v4 = vpack.c.bf16 %v1419_v62, %v1415_v60  ;;  %v1521_v5 = vpack.c.bf16 %v1421_v63, %v1417_v61  ;;  %v1433_v62 = vld [vmem:[#allocation2 + $0x10] sm:$0xff] }
 0x250   : > { %v1520_v6 = vpack.c.bf16 %v1420_v2, %v1416_v0  ;;  %v1522_v7 = vpack.c.bf16 %v1422_v3, %v1418_v1  ;;  %v1101_v12 = vpop.f32.mrb[60].mxu0  ;;  %v1294_v13 = vpop.f32.mrb[60].mxu1 }
 0x251   : > { %v1102_v14 = vadd.f32 %v1101_v12, %v4028_v8  ;;  %v1295_v15 = vadd.f32 %v1294_v13, %v4030_v9  ;;  %v1103_v16 = vpop.f32.mrb[61].mxu0  ;;  %v1296_v17 = vpop.f32.mrb[61].mxu1 }
 0x252   : > { %v1104_v18 = vadd.f32 %v1103_v16, %v4032_v10  ;;  %v1297_v19 = vadd.f32 %v1296_v17, %v4034_v11  ;;  %v1105_v20 = vpop.f32.mrb[62].mxu0  ;;  %v1298_v21 = vpop.f32.mrb[62].mxu1  ;;  %1927 = vmatprep.mubr.bf16.mxu0 %v1520_v6  ;;  %2088 = vmatprep.mubr.bf16.mxu1 %v1522_v7 }
 0x253   : > { %v1106_v22 = vadd.f32 %v1105_v20, %v4028_v8  ;;  %v1299_v23 = vadd.f32 %v1298_v21, %v4030_v9  ;;  %v1107_v24 = vpop.f32.mrb[63].mxu0  ;;  %v1300_v25 = vpop.f32.mrb[63].mxu1  ;;  %1928 = vmatmul.mubr.bf16.gmra.mrb[120].mxu0 %v1519_v4  ;;  %2089 = vmatmul.mubr.bf16.gmra.mrb[120].mxu1 %v1521_v5  ;;  %v1423_v28 = vmax.f32 %v1102_v14, 0.0  ;;  %v1425_v29 = vmax.f32 %v1295_v15, 0.0  ;;  %v1434_v4 = vld [vmem:[#allocation2 + $0x18] sm:$0xff]  ;;  %v1435_v20 = vld [vmem:[#allocation2 + $0x20] sm:$0xff] }
 0x254   : > { %v1108_v26 = vadd.f32 %v1107_v24, %v4032_v10  ;;  %v1301_v27 = vadd.f32 %v1300_v25, %v4034_v11  ;;  %v1424_v32 = vmax.f32 %v1104_v18, 0.0  ;;  %v1426_v33 = vmax.f32 %v1297_v19, 0.0 }
 0x255   : > { %v1427_v30 = vmax.f32 %v1106_v22, 0.0  ;;  %v1429_v31 = vmax.f32 %v1299_v23, 0.0 }
 0x256   : > { %v1428_v34 = vmax.f32 %v1108_v26, 0.0  ;;  %v1430_v35 = vmax.f32 %v1301_v27, 0.0  ;;  %v1436_v26 = vld [vmem:[#allocation2 + $0x28] sm:$0xff] }
 0x257   : > { %v1523_v36 = vpack.c.bf16 %v1427_v30, %v1423_v28  ;;  %v1525_v8 = vpack.c.bf16 %v1429_v31, %v1425_v29 }
 0x258   : > { %v1524_v37 = vpack.c.bf16 %v1428_v34, %v1424_v32  ;;  %v1526_v9 = vpack.c.bf16 %v1430_v35, %v1426_v33 }
 0x25a   : > { %1935 = vmatprep.mubr.bf16.mxu0 %v1524_v37  ;;  %2096 = vmatprep.mubr.bf16.mxu1 %v1526_v9  ;;  %v1437_v37 = vld [vmem:[#allocation2 + $0x30] sm:$0xff] }
 0x25b   : > { %1936 = vmatmul.mubr.bf16.gmra.mrb[124].mxu0 %v1523_v36  ;;  %2097 = vmatmul.mubr.bf16.gmra.mrb[124].mxu1 %v1525_v8 }
 0x2b6   : > { %v2854_v38 = vpop.f32.mrb[64].mxu0  ;;  %v2966_v10 = vpop.f32.mrb[64].mxu1 }
 0x2b7   : > { %v2855_v39 = vpop.f32.mrb[65].mxu0  ;;  %v2967_v11 = vpop.f32.mrb[65].mxu1 }
 0x2b8   : > { %v2856_v40 = vadd.f32 %v2855_v39, %v2854_v38  ;;  %v2968_v41 = vadd.f32 %v2967_v11, %v2966_v10  ;;  %v2857_v42 = vpop.f32.mrb[66].mxu0  ;;  %v2969_v43 = vpop.f32.mrb[66].mxu1 }
 0x2b9   : > { %v2858_v45 = vpop.f32.mrb[67].mxu0  ;;  %v2970_v46 = vpop.f32.mrb[67].mxu1 }
 0x2ba   : > { %v1979_v47 = vadd.f32 %v2968_v41, %v2856_v40  ;;  %v2859_v48 = vadd.f32 %v2858_v45, %v2857_v42  ;;  %v2971_v49 = vadd.f32 %v2970_v46, %v2969_v43  ;;  %v1438_v40 = vld [vmem:[#allocation2 + $0x38] sm:$0xff] }
 0x2bc   : > { %v2105_v51 = vadd.f32 %v1979_v47, %v1431_v44  ;;  %v1982_v52 = vadd.f32 %v2971_v49, %v2859_v48 }
 0x2be   : > { %2137 = vst [vmem:[#allocation2] sm:$0xff] %v2105_v51  ;;  %v2106_v53 = vadd.f32 %v1982_v52, %v1432_v50  ;;  %v2860_v54 = vpop.f32.mrb[68].mxu0  ;;  %v2972_v55 = vpop.f32.mrb[68].mxu1  ;;  %v1439_v52 = vld [vmem:[#allocation2 + $0x40] sm:$0xff] }
 0x2bf   : > { %v2861_v56 = vpop.f32.mrb[69].mxu0  ;;  %v2973_v57 = vpop.f32.mrb[69].mxu1 }
 0x2c0   : > { %2138 = vst [vmem:[#allocation2 + $0x8] sm:$0xff] %v2106_v53  ;;  %v2862_v58 = vadd.f32 %v2861_v56, %v2860_v54  ;;  %v2974_v59 = vadd.f32 %v2973_v57, %v2972_v55  ;;  %v2863_v60 = vpop.f32.mrb[70].mxu0  ;;  %v2975_v61 = vpop.f32.mrb[70].mxu1 }
 0x2c1   : > { %v2864_v63 = vpop.f32.mrb[71].mxu0  ;;  %v2976_v0 = vpop.f32.mrb[71].mxu1 }
 0x2c2   : > { %v1987_v1 = vadd.f32 %v2974_v59, %v2862_v58  ;;  %v2865_v2 = vadd.f32 %v2864_v63, %v2863_v60  ;;  %v2977_v3 = vadd.f32 %v2976_v0, %v2975_v61  ;;  %v1440_v58 = vld [vmem:[#allocation2 + $0x48] sm:$0xff] }
 0x2c4   : > { %v2107_v5 = vadd.f32 %v1987_v1, %v1433_v62  ;;  %v1990_v6 = vadd.f32 %v2977_v3, %v2865_v2 }
 0x2c6   : > { %2139 = vst [vmem:[#allocation2 + $0x10] sm:$0xff] %v2107_v5  ;;  %v2108_v7 = vadd.f32 %v1990_v6, %v1434_v4  ;;  %v2866_v12 = vpop.f32.mrb[72].mxu0  ;;  %v2978_v13 = vpop.f32.mrb[72].mxu1  ;;  %v1441_v6 = vld [vmem:[#allocation2 + $0x50] sm:$0xff] }
 0x2c7   : > { %v2867_v14 = vpop.f32.mrb[73].mxu0  ;;  %v2979_v15 = vpop.f32.mrb[73].mxu1 }
 0x2c8   : > { %2140 = vst [vmem:[#allocation2 + $0x18] sm:$0xff] %v2108_v7  ;;  %v2868_v16 = vadd.f32 %v2867_v14, %v2866_v12  ;;  %v2980_v17 = vadd.f32 %v2979_v15, %v2978_v13  ;;  %v2869_v18 = vpop.f32.mrb[74].mxu0  ;;  %v2981_v19 = vpop.f32.mrb[74].mxu1 }
 0x2c9   : > { %v2870_v21 = vpop.f32.mrb[75].mxu0  ;;  %v2982_v22 = vpop.f32.mrb[75].mxu1 }
 0x2ca   : > { %v1995_v23 = vadd.f32 %v2980_v17, %v2868_v16  ;;  %v2871_v24 = vadd.f32 %v2870_v21, %v2869_v18  ;;  %v2983_v25 = vadd.f32 %v2982_v22, %v2981_v19  ;;  %v1442_v16 = vld [vmem:[#allocation2 + $0x58] sm:$0xff] }
 0x2cc   : > { %v2109_v27 = vadd.f32 %v1995_v23, %v1435_v20  ;;  %v1998_v28 = vadd.f32 %v2983_v25, %v2871_v24 }
 0x2ce   : > { %2141 = vst [vmem:[#allocation2 + $0x20] sm:$0xff] %v2109_v27  ;;  %v2110_v29 = vadd.f32 %v1998_v28, %v1436_v26  ;;  %v2872_v30 = vpop.f32.mrb[76].mxu0  ;;  %v2984_v31 = vpop.f32.mrb[76].mxu1  ;;  %v1443_v28 = vld [vmem:[#allocation2 + $0x60] sm:$0xff] }
 0x2cf   : > { %v2873_v32 = vpop.f32.mrb[77].mxu0  ;;  %v2985_v33 = vpop.f32.mrb[77].mxu1 }
 0x2d0   : > { %2142 = vst [vmem:[#allocation2 + $0x28] sm:$0xff] %v2110_v29  ;;  %v2874_v34 = vadd.f32 %v2873_v32, %v2872_v30  ;;  %v2986_v35 = vadd.f32 %v2985_v33, %v2984_v31  ;;  %v2875_v36 = vpop.f32.mrb[78].mxu0  ;;  %v2987_v8 = vpop.f32.mrb[78].mxu1 }
 0x2d1   : > { %v2876_v9 = vpop.f32.mrb[79].mxu0  ;;  %v2988_v38 = vpop.f32.mrb[79].mxu1 }
 0x2d2   : > { %v2003_v10 = vadd.f32 %v2986_v35, %v2874_v34  ;;  %v2877_v39 = vadd.f32 %v2876_v9, %v2875_v36  ;;  %v2989_v11 = vadd.f32 %v2988_v38, %v2987_v8  ;;  %v1444_v34 = vld [vmem:[#allocation2 + $0x68] sm:$0xff] }
 0x2d4   : > { %v2111_v41 = vadd.f32 %v2003_v10, %v1437_v37  ;;  %v2006_v42 = vadd.f32 %v2989_v11, %v2877_v39 }
 0x2d6   : > { %2143 = vst [vmem:[#allocation2 + $0x30] sm:$0xff] %v2111_v41  ;;  %v2112_v43 = vadd.f32 %v2006_v42, %v1438_v40  ;;  %v2878_v44 = vpop.f32.mrb[80].mxu0  ;;  %v2990_v45 = vpop.f32.mrb[80].mxu1  ;;  %v1445_v42 = vld [vmem:[#allocation2 + $0x70] sm:$0xff] }
 0x2d7   : > { %v2879_v46 = vpop.f32.mrb[81].mxu0  ;;  %v2991_v47 = vpop.f32.mrb[81].mxu1 }
 0x2d8   : > { %2144 = vst [vmem:[#allocation2 + $0x38] sm:$0xff] %v2112_v43  ;;  %v2880_v48 = vadd.f32 %v2879_v46, %v2878_v44  ;;  %v2992_v49 = vadd.f32 %v2991_v47, %v2990_v45  ;;  %v2881_v50 = vpop.f32.mrb[82].mxu0  ;;  %v2993_v51 = vpop.f32.mrb[82].mxu1 }
 0x2d9   : > { %v2882_v53 = vpop.f32.mrb[83].mxu0  ;;  %v2994_v54 = vpop.f32.mrb[83].mxu1 }
 0x2da   : > { %v2011_v55 = vadd.f32 %v2992_v49, %v2880_v48  ;;  %v2883_v56 = vadd.f32 %v2882_v53, %v2881_v50  ;;  %v2995_v57 = vadd.f32 %v2994_v54, %v2993_v51  ;;  %v1446_v48 = vld [vmem:[#allocation2 + $0x78] sm:$0xff] }
 0x2dc   : > { %v2113_v59 = vadd.f32 %v2011_v55, %v1439_v52  ;;  %v2014_v60 = vadd.f32 %v2995_v57, %v2883_v56 }
 0x2de   : > { %2145 = vst [vmem:[#allocation2 + $0x40] sm:$0xff] %v2113_v59  ;;  %v2114_v61 = vadd.f32 %v2014_v60, %v1440_v58  ;;  %v2884_v62 = vpop.f32.mrb[84].mxu0  ;;  %v2996_v63 = vpop.f32.mrb[84].mxu1  ;;  %v1447_v60 = vld [vmem:[#allocation2 + $0x80] sm:$0xff] }
 0x2df   : > { %v2885_v0 = vpop.f32.mrb[85].mxu0  ;;  %v2997_v1 = vpop.f32.mrb[85].mxu1 }
 0x2e0   : > { %2146 = vst [vmem:[#allocation2 + $0x48] sm:$0xff] %v2114_v61  ;;  %v2886_v2 = vadd.f32 %v2885_v0, %v2884_v62  ;;  %v2998_v3 = vadd.f32 %v2997_v1, %v2996_v63  ;;  %v2887_v4 = vpop.f32.mrb[86].mxu0  ;;  %v2999_v5 = vpop.f32.mrb[86].mxu1 }
 0x2e1   : > { %v2888_v7 = vpop.f32.mrb[87].mxu0  ;;  %v3000_v12 = vpop.f32.mrb[87].mxu1 }
 0x2e2   : > { %v2019_v13 = vadd.f32 %v2998_v3, %v2886_v2  ;;  %v2889_v14 = vadd.f32 %v2888_v7, %v2887_v4  ;;  %v3001_v15 = vadd.f32 %v3000_v12, %v2999_v5  ;;  %v1448_v2 = vld [vmem:[#allocation2 + $0x88] sm:$0xff] }
 0x2e4   : > { %v2115_v17 = vadd.f32 %v2019_v13, %v1441_v6  ;;  %v2022_v18 = vadd.f32 %v3001_v15, %v2889_v14 }
 0x2e6   : > { %2147 = vst [vmem:[#allocation2 + $0x50] sm:$0xff] %v2115_v17  ;;  %v2116_v19 = vadd.f32 %v2022_v18, %v1442_v16  ;;  %v2890_v20 = vpop.f32.mrb[88].mxu0  ;;  %v3002_v21 = vpop.f32.mrb[88].mxu1  ;;  %v1449_v18 = vld [vmem:[#allocation2 + $0x90] sm:$0xff] }
 0x2e7   : > { %v2891_v22 = vpop.f32.mrb[89].mxu0  ;;  %v3003_v23 = vpop.f32.mrb[89].mxu1 }
 0x2e8   : > { %2148 = vst [vmem:[#allocation2 + $0x58] sm:$0xff] %v2116_v19  ;;  %v2892_v24 = vadd.f32 %v2891_v22, %v2890_v20  ;;  %v3004_v25 = vadd.f32 %v3003_v23, %v3002_v21  ;;  %v2893_v26 = vpop.f32.mrb[90].mxu0  ;;  %v3005_v27 = vpop.f32.mrb[90].mxu1 }
 0x2e9   : > { %v2894_v29 = vpop.f32.mrb[91].mxu0  ;;  %v3006_v30 = vpop.f32.mrb[91].mxu1 }
 0x2ea   : > { %v2027_v31 = vadd.f32 %v3004_v25, %v2892_v24  ;;  %v2895_v32 = vadd.f32 %v2894_v29, %v2893_v26  ;;  %v3007_v33 = vadd.f32 %v3006_v30, %v3005_v27  ;;  %v1450_v24 = vld [vmem:[#allocation2 + $0x98] sm:$0xff] }
 0x2ec   : > { %v2117_v35 = vadd.f32 %v2027_v31, %v1443_v28  ;;  %v2030_v36 = vadd.f32 %v3007_v33, %v2895_v32 }
 0x2ee   : > { %2149 = vst [vmem:[#allocation2 + $0x60] sm:$0xff] %v2117_v35  ;;  %v2118_v8 = vadd.f32 %v2030_v36, %v1444_v34  ;;  %v2896_v37 = vpop.f32.mrb[92].mxu0  ;;  %v3008_v9 = vpop.f32.mrb[92].mxu1  ;;  %v1451_v36 = vld [vmem:[#allocation2 + $0xa0] sm:$0xff] }
 0x2ef   : > { %v2897_v38 = vpop.f32.mrb[93].mxu0  ;;  %v3009_v10 = vpop.f32.mrb[93].mxu1 }
 0x2f0   : > { %2150 = vst [vmem:[#allocation2 + $0x68] sm:$0xff] %v2118_v8  ;;  %v2898_v39 = vadd.f32 %v2897_v38, %v2896_v37  ;;  %v3010_v11 = vadd.f32 %v3009_v10, %v3008_v9  ;;  %v2899_v40 = vpop.f32.mrb[94].mxu0  ;;  %v3011_v41 = vpop.f32.mrb[94].mxu1 }
 0x2f1   : > { %v2900_v43 = vpop.f32.mrb[95].mxu0  ;;  %v3012_v44 = vpop.f32.mrb[95].mxu1 }
 0x2f2   : > { %v2035_v45 = vadd.f32 %v3010_v11, %v2898_v39  ;;  %v2901_v46 = vadd.f32 %v2900_v43, %v2899_v40  ;;  %v3013_v47 = vadd.f32 %v3012_v44, %v3011_v41  ;;  %v1452_v39 = vld [vmem:[#allocation2 + $0xa8] sm:$0xff] }
 0x2f4   : > { %v2119_v49 = vadd.f32 %v2035_v45, %v1445_v42  ;;  %v2038_v50 = vadd.f32 %v3013_v47, %v2901_v46 }
 0x2f6   : > { %2151 = vst [vmem:[#allocation2 + $0x70] sm:$0xff] %v2119_v49  ;;  %v2120_v51 = vadd.f32 %v2038_v50, %v1446_v48  ;;  %v2902_v52 = vpop.f32.mrb[96].mxu0  ;;  %v3014_v53 = vpop.f32.mrb[96].mxu1  ;;  %v1453_v50 = vld [vmem:[#allocation2 + $0xb0] sm:$0xff] }
 0x2f7   : > { %v2903_v54 = vpop.f32.mrb[97].mxu0  ;;  %v3015_v55 = vpop.f32.mrb[97].mxu1 }
 0x2f8   : > { %2152 = vst [vmem:[#allocation2 + $0x78] sm:$0xff] %v2120_v51  ;;  %v2904_v56 = vadd.f32 %v2903_v54, %v2902_v52  ;;  %v3016_v57 = vadd.f32 %v3015_v55, %v3014_v53  ;;  %v2905_v58 = vpop.f32.mrb[98].mxu0  ;;  %v3017_v59 = vpop.f32.mrb[98].mxu1 }
 0x2f9   : > { %v2906_v61 = vpop.f32.mrb[99].mxu0  ;;  %v3018_v62 = vpop.f32.mrb[99].mxu1 }
 0x2fa   : > { %v2043_v63 = vadd.f32 %v3016_v57, %v2904_v56  ;;  %v2907_v0 = vadd.f32 %v2906_v61, %v2905_v58  ;;  %v3019_v1 = vadd.f32 %v3018_v62, %v3017_v59  ;;  %v1454_v56 = vld [vmem:[#allocation2 + $0xb8] sm:$0xff] }
 0x2fc   : > { %v2121_v3 = vadd.f32 %v2043_v63, %v1447_v60  ;;  %v2046_v4 = vadd.f32 %v3019_v1, %v2907_v0 }
 0x2fe   : > { %2153 = vst [vmem:[#allocation2 + $0x80] sm:$0xff] %v2121_v3  ;;  %v2122_v5 = vadd.f32 %v2046_v4, %v1448_v2  ;;  %v2908_v6 = vpop.f32.mrb[100].mxu0  ;;  %v3020_v7 = vpop.f32.mrb[100].mxu1  ;;  %v1455_v4 = vld [vmem:[#allocation2 + $0xc0] sm:$0xff] }
 0x2ff   : > { %v2909_v12 = vpop.f32.mrb[101].mxu0  ;;  %v3021_v13 = vpop.f32.mrb[101].mxu1 }
 0x300   : > { %2154 = vst [vmem:[#allocation2 + $0x88] sm:$0xff] %v2122_v5  ;;  %v2910_v14 = vadd.f32 %v2909_v12, %v2908_v6  ;;  %v3022_v15 = vadd.f32 %v3021_v13, %v3020_v7  ;;  %v2911_v16 = vpop.f32.mrb[102].mxu0  ;;  %v3023_v17 = vpop.f32.mrb[102].mxu1 }
 0x301   : > { %v2912_v19 = vpop.f32.mrb[103].mxu0  ;;  %v3024_v20 = vpop.f32.mrb[103].mxu1 }
 0x302   : > { %v2051_v21 = vadd.f32 %v3022_v15, %v2910_v14  ;;  %v2913_v22 = vadd.f32 %v2912_v19, %v2911_v16  ;;  %v3025_v23 = vadd.f32 %v3024_v20, %v3023_v17  ;;  %v1456_v14 = vld [vmem:[#allocation2 + $0xc8] sm:$0xff] }
 0x304   : > { %v2123_v25 = vadd.f32 %v2051_v21, %v1449_v18  ;;  %v2054_v26 = vadd.f32 %v3025_v23, %v2913_v22 }
 0x306   : > { %2155 = vst [vmem:[#allocation2 + $0x90] sm:$0xff] %v2123_v25  ;;  %v2124_v27 = vadd.f32 %v2054_v26, %v1450_v24  ;;  %v2914_v28 = vpop.f32.mrb[104].mxu0  ;;  %v3026_v29 = vpop.f32.mrb[104].mxu1  ;;  %v1457_v26 = vld [vmem:[#allocation2 + $0xd0] sm:$0xff] }
 0x307   : > { %v2915_v30 = vpop.f32.mrb[105].mxu0  ;;  %v3027_v31 = vpop.f32.mrb[105].mxu1 }
 0x308   : > { %2156 = vst [vmem:[#allocation2 + $0x98] sm:$0xff] %v2124_v27  ;;  %v2916_v32 = vadd.f32 %v2915_v30, %v2914_v28  ;;  %v3028_v33 = vadd.f32 %v3027_v31, %v3026_v29  ;;  %v2917_v34 = vpop.f32.mrb[106].mxu0  ;;  %v3029_v35 = vpop.f32.mrb[106].mxu1 }
 0x309   : > { %v2918_v8 = vpop.f32.mrb[107].mxu0  ;;  %v3030_v37 = vpop.f32.mrb[107].mxu1 }
 0x30a   : > { %v2059_v9 = vadd.f32 %v3028_v33, %v2916_v32  ;;  %v2919_v38 = vadd.f32 %v2918_v8, %v2917_v34  ;;  %v3031_v10 = vadd.f32 %v3030_v37, %v3029_v35  ;;  %v1458_v32 = vld [vmem:[#allocation2 + $0xd8] sm:$0xff] }
 0x30c   : > { %v2125_v11 = vadd.f32 %v2059_v9, %v1451_v36  ;;  %v2062_v40 = vadd.f32 %v3031_v10, %v2919_v38 }
 0x30e   : > { %2157 = vst [vmem:[#allocation2 + $0xa0] sm:$0xff] %v2125_v11  ;;  %v2126_v41 = vadd.f32 %v2062_v40, %v1452_v39  ;;  %v2920_v42 = vpop.f32.mrb[108].mxu0  ;;  %v3032_v43 = vpop.f32.mrb[108].mxu1  ;;  %v1459_v40 = vld [vmem:[#allocation2 + $0xe0] sm:$0xff] }
 0x30f   : > { %v2921_v44 = vpop.f32.mrb[109].mxu0  ;;  %v3033_v45 = vpop.f32.mrb[109].mxu1 }
 0x310   : > { %2158 = vst [vmem:[#allocation2 + $0xa8] sm:$0xff] %v2126_v41  ;;  %v2922_v46 = vadd.f32 %v2921_v44, %v2920_v42  ;;  %v3034_v47 = vadd.f32 %v3033_v45, %v3032_v43  ;;  %v2923_v48 = vpop.f32.mrb[110].mxu0  ;;  %v3035_v49 = vpop.f32.mrb[110].mxu1 }
 0x311   : > { %v2924_v51 = vpop.f32.mrb[111].mxu0  ;;  %v3036_v52 = vpop.f32.mrb[111].mxu1 }
 0x312   : > { %v2067_v53 = vadd.f32 %v3034_v47, %v2922_v46  ;;  %v2925_v54 = vadd.f32 %v2924_v51, %v2923_v48  ;;  %v3037_v55 = vadd.f32 %v3036_v52, %v3035_v49  ;;  %v1460_v46 = vld [vmem:[#allocation2 + $0xe8] sm:$0xff] }
 0x314   : > { %v2127_v57 = vadd.f32 %v2067_v53, %v1453_v50  ;;  %v2070_v58 = vadd.f32 %v3037_v55, %v2925_v54 }
 0x316   : > { %2159 = vst [vmem:[#allocation2 + $0xb0] sm:$0xff] %v2127_v57  ;;  %v2128_v59 = vadd.f32 %v2070_v58, %v1454_v56  ;;  %v2926_v60 = vpop.f32.mrb[112].mxu0  ;;  %v3038_v61 = vpop.f32.mrb[112].mxu1  ;;  %v1461_v58 = vld [vmem:[#allocation2 + $0xf0] sm:$0xff] }
 0x317   : > { %v2927_v62 = vpop.f32.mrb[113].mxu0  ;;  %v3039_v63 = vpop.f32.mrb[113].mxu1 }
 0x318   : > { %2160 = vst [vmem:[#allocation2 + $0xb8] sm:$0xff] %v2128_v59  ;;  %v2928_v0 = vadd.f32 %v2927_v62, %v2926_v60  ;;  %v3040_v1 = vadd.f32 %v3039_v63, %v3038_v61  ;;  %v2929_v2 = vpop.f32.mrb[114].mxu0  ;;  %v3041_v3 = vpop.f32.mrb[114].mxu1 }
 0x319   : > { %v2930_v5 = vpop.f32.mrb[115].mxu0  ;;  %v3042_v6 = vpop.f32.mrb[115].mxu1 }
 0x31a   : > { %v2075_v7 = vadd.f32 %v3040_v1, %v2928_v0  ;;  %v2931_v12 = vadd.f32 %v2930_v5, %v2929_v2  ;;  %v3043_v13 = vadd.f32 %v3042_v6, %v3041_v3  ;;  %v1462_v0 = vld [vmem:[#allocation2 + $0xf8] sm:$0xff]  ;;  %v2174_v5 = vld [vmem:[#allocation2 + $0x8] sm:$0xff] (!%p2670_p0)  ;;  %v4168_v6 = vld [vmem:[%s4309_s18] ss:$0 sm:$0xff] (!%p2670_p0) }
 0x31c   : > { %v2129_v15 = vadd.f32 %v2075_v7, %v1455_v4  ;;  %v2078_v16 = vadd.f32 %v3043_v13, %v2931_v12  ;;  %v2173_v4 = vld [vmem:[#allocation2] sm:$0xff] (!%p2670_p0)  ;;  %v2213_v12 = vadd.f32 (!%p2670_p0), %v4168_v6, %v2174_v5  ;;  %v2175_v13 = vld [vmem:[#allocation2 + $0x10] sm:$0xff] (!%p2670_p0) }
 0x31d   : > { %v2212_v7 = vadd.f32 (!%p2670_p0), %v4168_v6, %v2173_v4 }
 0x31e   : > { %2161 = vst [vmem:[#allocation2 + $0xc0] sm:$0xff] %v2129_v15  ;;  %v2130_v17 = vadd.f32 %v2078_v16, %v1456_v14  ;;  %v2932_v18 = vpop.f32.mrb[116].mxu0  ;;  %v3044_v19 = vpop.f32.mrb[116].mxu1  ;;  %v2176_v14 = vld [vmem:[#allocation2 + $0x18] sm:$0xff] (!%p2670_p0)  ;;  %v2177_v15 = vld [vmem:[#allocation2 + $0x20] sm:$0xff] (!%p2670_p0)  ;;  %v2214_v16 = vadd.f32 (!%p2670_p0), %v4168_v6, %v2175_v13 }
 0x31f   : > { %v2933_v20 = vpop.f32.mrb[117].mxu0  ;;  %v3045_v21 = vpop.f32.mrb[117].mxu1 }
 0x320   : > { %2162 = vst [vmem:[#allocation2 + $0xc8] sm:$0xff] %v2130_v17  ;;  %v2934_v22 = vadd.f32 %v2933_v20, %v2932_v18  ;;  %v3046_v23 = vadd.f32 %v3045_v21, %v3044_v19  ;;  %v2935_v24 = vpop.f32.mrb[118].mxu0  ;;  %v3047_v25 = vpop.f32.mrb[118].mxu1  ;;  %v2215_v17 = vadd.f32 (!%p2670_p0), %v4168_v6, %v2176_v14  ;;  %v2178_v18 = vld [vmem:[#allocation2 + $0x28] sm:$0xff] (!%p2670_p0)  ;;  %v2216_v19 = vadd.f32 (!%p2670_p0), %v4168_v6, %v2177_v15  ;;  %v2179_v20 = vld [vmem:[#allocation2 + $0x30] sm:$0xff] (!%p2670_p0)  ;;  %v2180_v21 = vld [vmem:[#allocation2 + $0x38] sm:$0xff] (!%p2670_p0) }
 0x321   : > { %v2936_v27 = vpop.f32.mrb[119].mxu0  ;;  %v3048_v28 = vpop.f32.mrb[119].mxu1 }
 0x322   : > { %v2083_v29 = vadd.f32 %v3046_v23, %v2934_v22  ;;  %v2937_v30 = vadd.f32 %v2936_v27, %v2935_v24  ;;  %v3049_v31 = vadd.f32 %v3048_v28, %v3047_v25  ;;  %v2746_v22 = vpack.c.bf16 (!%p2670_p0), %v2213_v12, %v2212_v7  ;;  %v2182_v27 = vld [vmem:[#allocation2 + $0x48] sm:$0xff] (!%p2670_p0)  ;;  %v2183_v28 = vld [vmem:[#allocation2 + $0x50] sm:$0xff] (!%p2670_p0) }
 0x323   : > { %v2217_v23 = vadd.f32 (!%p2670_p0), %v4168_v6, %v2178_v18  ;;  %v2218_v24 = vadd.f32 (!%p2670_p0), %v4168_v6, %v2179_v20  ;;  %v2219_v25 = vadd.f32 (!%p2670_p0), %v4168_v6, %v2180_v21 }
 0x324   : > { %v2131_v33 = vadd.f32 %v2083_v29, %v1457_v26  ;;  %v2086_v34 = vadd.f32 %v3049_v31, %v2937_v30  ;;  %v2181_v26 = vld [vmem:[#allocation2 + $0x40] sm:$0xff] (!%p2670_p0)  ;;  %v2751_v29 = vpack.c.bf16 (!%p2670_p0), %v2215_v17, %v2214_v16  ;;  %v2221_v31 = vadd.f32 (!%p2670_p0), %v4168_v6, %v2182_v27  ;;  %2747 = vst [vmem:[%s3864_s8] sm:$0xff] (!%p2670_p0), %v2746_v22  }
 0x325   : > { %v2220_v30 = vadd.f32 (!%p2670_p0), %v4168_v6, %v2181_v26 }
 0x326   : > { %2163 = vst [vmem:[#allocation2 + $0xd0] sm:$0xff] %v2131_v33  ;;  %v2132_v35 = vadd.f32 %v2086_v34, %v1458_v32  ;;  %v2938_v36 = vpop.f32.mrb[120].mxu0  ;;  %v3050_v8 = vpop.f32.mrb[120].mxu1  ;;  %v2184_v32 = vld [vmem:[#allocation2 + $0x58] sm:$0xff] (!%p2670_p0)  ;;  %v2222_v33 = vadd.f32 (!%p2670_p0), %v4168_v6, %v2183_v28  ;;  %v2185_v34 = vld [vmem:[#allocation2 + $0x60] sm:$0xff] (!%p2670_p0)  ;;  %2823 = vst [vmem:[%s3864_s8 + $0x8] sm:$0xff] (!%p2670_p0), %v2751_v29  }
 0x327   : > { %v2939_v37 = vpop.f32.mrb[121].mxu0  ;;  %v3051_v9 = vpop.f32.mrb[121].mxu1 }
 0x328   : > { %2164 = vst [vmem:[#allocation2 + $0xd8] sm:$0xff] %v2132_v35  ;;  %v2940_v38 = vadd.f32 %v2939_v37, %v2938_v36  ;;  %v3052_v10 = vadd.f32 %v3051_v9, %v3050_v8  ;;  %v2941_v39 = vpop.f32.mrb[122].mxu0  ;;  %v3053_v11 = vpop.f32.mrb[122].mxu1  ;;  %v2186_v35 = vld [vmem:[#allocation2 + $0x68] sm:$0xff] (!%p2670_p0)  ;;  %v2756_v36 = vpack.c.bf16 (!%p2670_p0), %v2217_v23, %v2216_v19  ;;  %v2761_v8 = vpack.c.bf16 (!%p2670_p0), %v2219_v25, %v2218_v24 }
 0x329   : > { %v2942_v41 = vpop.f32.mrb[123].mxu0  ;;  %v3054_v42 = vpop.f32.mrb[123].mxu1  ;;  %v2223_v37 = vadd.f32 (!%p2670_p0), %v4168_v6, %v2184_v32  ;;  %v2224_v9 = vadd.f32 (!%p2670_p0), %v4168_v6, %v2185_v34 }
 0x32a   : > { %v2091_v43 = vadd.f32 %v3052_v10, %v2940_v38  ;;  %v2943_v44 = vadd.f32 %v2942_v41, %v2941_v39  ;;  %v3055_v45 = vadd.f32 %v3054_v42, %v3053_v11  ;;  %v2187_v38 = vld [vmem:[#allocation2 + $0x70] sm:$0xff] (!%p2670_p0)  ;;  %v2188_v10 = vld [vmem:[#allocation2 + $0x78] sm:$0xff] (!%p2670_p0)  ;;  %v2189_v39 = vld [vmem:[#allocation2 + $0x80] sm:$0xff] (!%p2670_p0)  ;;  %v2766_v11 = vpack.c.bf16 (!%p2670_p0), %v2221_v31, %v2220_v30  ;;  %2824 = vst [vmem:[%s3864_s8 + $0x10] sm:$0xff] (!%p2670_p0), %v2756_v36  }
 0x32b   : > { %v2226_v41 = vadd.f32 (!%p2670_p0), %v4168_v6, %v2187_v38  ;;  %v2227_v42 = vadd.f32 (!%p2670_p0), %v4168_v6, %v2188_v10  ;;  %2825 = vst [vmem:[%s3864_s8 + $0x18] sm:$0xff] (!%p2670_p0), %v2761_v8  }
 0x32c   : > { %v2133_v47 = vadd.f32 %v2091_v43, %v1459_v40  ;;  %v2094_v48 = vadd.f32 %v3055_v45, %v2943_v44  ;;  %v2225_v40 = vadd.f32 (!%p2670_p0), %v4168_v6, %v2186_v35  ;;  %v2190_v43 = vld [vmem:[#allocation2 + $0x88] sm:$0xff] (!%p2670_p0)  ;;  %v2191_v44 = vld [vmem:[#allocation2 + $0x90] sm:$0xff] (!%p2670_p0)  ;;  %v2192_v45 = vld [vmem:[#allocation2 + $0x98] sm:$0xff] (!%p2670_p0)  ;;  %2826 = vst [vmem:[%s3864_s8 + $0x20] sm:$0xff] (!%p2670_p0), %v2766_v11  }
 0x32e   : > { %2165 = vst [vmem:[#allocation2 + $0xe0] sm:$0xff] %v2133_v47  ;;  %v2134_v49 = vadd.f32 %v2094_v48, %v1460_v46  ;;  %v2944_v50 = vpop.f32.mrb[124].mxu0  ;;  %v3056_v51 = vpop.f32.mrb[124].mxu1  ;;  %v2771_v46 = vpack.c.bf16 (!%p2670_p0), %v2223_v37, %v2222_v33  ;;  %v2228_v47 = vadd.f32 (!%p2670_p0), %v4168_v6, %v2189_v39  ;;  %v2229_v48 = vadd.f32 (!%p2670_p0), %v4168_v6, %v2190_v43 }
 0x32f   : > { %v2945_v52 = vpop.f32.mrb[125].mxu0  ;;  %v3057_v53 = vpop.f32.mrb[125].mxu1 }
 0x330   : > { %2166 = vst [vmem:[#allocation2 + $0xe8] sm:$0xff] %v2134_v49  ;;  %v2946_v54 = vadd.f32 %v2945_v52, %v2944_v50  ;;  %v3058_v55 = vadd.f32 %v3057_v53, %v3056_v51  ;;  %v2947_v56 = vpop.f32.mrb[126].mxu0  ;;  %v3059_v57 = vpop.f32.mrb[126].mxu1  ;;  %v2230_v49 = vadd.f32 (!%p2670_p0), %v4168_v6, %v2191_v44  ;;  %v2193_v50 = vld [vmem:[#allocation2 + $0xa0] sm:$0xff] (!%p2670_p0)  ;;  %v2194_v51 = vld [vmem:[#allocation2 + $0xa8] sm:$0xff] (!%p2670_p0)  ;;  %v2195_v52 = vld [vmem:[#allocation2 + $0xb0] sm:$0xff] (!%p2670_p0)  ;;  %v2776_v53 = vpack.c.bf16 (!%p2670_p0), %v2225_v40, %v2224_v9 }
 0x331   : > { %v2948_v59 = vpop.f32.mrb[127].mxu0  ;;  %v3060_v60 = vpop.f32.mrb[127].mxu1  ;;  %2827 = vst [vmem:[%s3864_s8 + $0x28] sm:$0xff] (!%p2670_p0), %v2771_v46  }
 0x332   : > { %v2099_v61 = vadd.f32 %v3058_v55, %v2946_v54  ;;  %v2949_v62 = vadd.f32 %v2948_v59, %v2947_v56  ;;  %v3061_v63 = vadd.f32 %v3060_v60, %v3059_v57  ;;  %2172 = sbr.rel (%p2670_p0) target bundleno = 837 (0x345), region = 64  ;;  %v2781_v54 = vpack.c.bf16 (!%p2670_p0), %v2227_v42, %v2226_v41  ;;  %v2196_v57 = vld [vmem:[#allocation2 + $0xb8] sm:$0xff] (!%p2670_p0)  ;;  %v2198_v59 = vld [vmem:[#allocation2 + $0xc8] sm:$0xff] (!%p2670_p0)  ;;  %2828 = vst [vmem:[%s3864_s8 + $0x30] sm:$0xff] (!%p2670_p0), %v2776_v53  }
 0x333   : > { %v2231_v55 = vadd.f32 (!%p2670_p0), %v4168_v6, %v2192_v45  ;;  %v2232_v56 = vadd.f32 (!%p2670_p0), %v4168_v6, %v2193_v50  ;;  %v2786_v60 = vpack.c.bf16 (!%p2670_p0), %v2229_v48, %v2228_v47  ;;  %v2237_v5 = vadd.f32 (!%p2670_p0), %v4168_v6, %v2198_v59 }
 0x334   : > { %v2135_v1 = vadd.f32 %v2099_v61, %v1461_v58  ;;  %v2102_v2 = vadd.f32 %v3061_v63, %v2949_v62  ;;  %v2197_v58 = vld [vmem:[#allocation2 + $0xc0] sm:$0xff] (!%p2670_p0)  ;;  %v2233_v61 = vadd.f32 (!%p2670_p0), %v4168_v6, %v2194_v51  ;;  %v2234_v62 = vadd.f32 (!%p2670_p0), %v4168_v6, %v2195_v52  ;;  %2829 = vst [vmem:[%s3864_s8 + $0x38] sm:$0xff] (!%p2670_p0), %v2781_v54  }
 0x335   : > { %v2235_v63 = vadd.f32 (!%p2670_p0), %v4168_v6, %v2196_v57  ;;  %v2236_v4 = vadd.f32 (!%p2670_p0), %v4168_v6, %v2197_v58  ;;  %2830 = vst [vmem:[%s3864_s8 + $0x40] sm:$0xff] (!%p2670_p0), %v2786_v60  }
 0x336   : > { %2167 = vst [vmem:[#allocation2 + $0xf0] sm:$0xff] %v2135_v1  ;;  %v2136_v3 = vadd.f32 %v2102_v2, %v1462_v0  ;;  %v2199_v0 = vld [vmem:[#allocation2 + $0xd0] sm:$0xff] (!%p2670_p0)  ;;  %v2200_v1 = vld [vmem:[#allocation2 + $0xd8] sm:$0xff] (!%p2670_p0)  ;;  %v2201_v2 = vld [vmem:[#allocation2 + $0xe0] sm:$0xff] (!%p2670_p0)  ;;  %v2796_v15 = vpack.c.bf16 (!%p2670_p0), %v2233_v61, %v2232_v56 }
 0x337   : > { %v2238_v7 = vadd.f32 (!%p2670_p0), %v4168_v6, %v2199_v0  ;;  %v2202_v12 = vld [vmem:[#allocation2 + $0xe8] sm:$0xff] (!%p2670_p0)  ;;  %v2801_v16 = vpack.c.bf16 (!%p2670_p0), %v2235_v63, %v2234_v62  ;;  %v2239_v17 = vadd.f32 (!%p2670_p0), %v4168_v6, %v2200_v1  ;;  %v2240_v18 = vadd.f32 (!%p2670_p0), %v4168_v6, %v2201_v2 }
 0x338   : > { %2168 = vst [vmem:[#allocation2 + $0xf8] sm:$0xff] %v2136_v3  ;;  %v2791_v3 = vpack.c.bf16 (!%p2670_p0), %v2231_v55, %v2230_v49  ;;  %v2806_v19 = vpack.c.bf16 (!%p2670_p0), %v2237_v5, %v2236_v4  ;;  %v2241_v20 = vadd.f32 (!%p2670_p0), %v4168_v6, %v2202_v12  ;;  %2832 = vst [vmem:[%s3864_s8 + $0x50] sm:$0xff] (!%p2670_p0), %v2796_v15  }
 0x339   : > { %2833 = vst [vmem:[%s3864_s8 + $0x58] sm:$0xff] %v2801_v16   ;;  %v2811_v23 = vpack.c.bf16 %v2239_v17, %v2238_v7 }
 0x33a   : > { %2831 = vst [vmem:[%s3864_s8 + $0x48] sm:$0xff] %v2791_v3   ;;  %2834 = vst [vmem:[%s3864_s8 + $0x60] sm:$0xff] %v2806_v19   ;;  %v2816_v24 = vpack.c.bf16 %v2241_v20, %v2240_v18 }
 0x33b   : > { %2835 = vst [vmem:[%s3864_s8 + $0x68] sm:$0xff] %v2811_v23  }
 0x33c   : > { %2836 = vst [vmem:[%s3864_s8 + $0x70] sm:$0xff] %v2816_v24  }
 0x33d   : > { %v2203_v13 = vld [vmem:[#allocation2 + $0xf0] sm:$0xff] }
 0x33e   : > { %v2242_v21 = vadd.f32 %v4168_v6, %v2203_v13 }
 0x33f   : > { %v2204_v14 = vld [vmem:[#allocation2 + $0xf8] sm:$0xff] }
 0x340   : > { %v2243_v22 = vadd.f32 %v4168_v6, %v2204_v14 }
 0x342   : > { %v2821_v25 = vpack.c.bf16 %v2243_v22, %v2242_v21 }
 0x344   : > { %2837 = vst [vmem:[%s3864_s8 + $0x78] sm:$0xff] %v2821_v25  }
 0x345 PF: > { %s24_s28 = sadd.s32 1, %s3524_s28   ;;  %s4310_s21 = sld [smem:[#allocation13_spill]] }
 0x346   : > { %p21_p6 = scmp.ge.s32.totalorder %s24_s28, 6   ;;  %s4311_s22 = sld [smem:[#allocation14_spill]] }
 0x347   : > { %s4312_s23 = sld [smem:[#allocation20_spill]]  ;;  %s4313_s25 = sld [smem:[#allocation17_spill]] }
 0x348   : > { %s4314_s11 = sld [smem:[#allocation18_spill]]  ;;  %s4315_s27 = sld [smem:[#allocation19_spill]] }
 0x349   : > { %s4316_s18 = smov %s3488_s19  ;;  %s4317_s19 = smov %s3492_s20 }
 0x34a   : > { %s4318_s20 = smov %s3729_s1  ;;  %s4319_s24 = smov %s3516_s26 }
 0x34b   :  { %23 = sbr.rel (!%p21_p6) target bundleno = 16 (0x10), region = 125 }
 0x34e   : > { %s4320_s26 = smov %s4314_s11 }
 0x352   :  { %2426 = vsyncpa [#allocation4], 1 }
 0x353   :  { %2428 = vsyncpa [#allocation4 + $0x1], 1 }
 0x354   :  { %2429 = vsyncpa [#allocation6], 1 }
 0x355   :  { %2431 = vsyncpa [#allocation6 + $0x1], 1 }
 0x356   :  { %2432 = vsyncpa [#allocation9], 1 }
 0x357   :  { %2434 = vsyncpa [#allocation9 + $0x1], 1 }

</bundles_post_ra>
